<compile_context>
chip_gen: v7x
topology: tpu7x:2x2x1
jax: 0.10.0
libtpu: 0.0.40
codegen_flags: <defaults>
</compile_context>

<pallas_src>
import functools

import jax
import jax.numpy as jnp
from jax.experimental import pallas as pl
from jax.experimental.pallas import tpu as pltpu


def _round_up(x, m):
    return (x + m - 1) // m * m


def _vmem_budget_bytes():
    """Generation-aware scoped-VMEM budget (leave ~25% headroom, cap ~100MiB)."""
    cap = 0
    try:
        cap = int(pltpu.get_tpu_info().vmem_capacity_bytes)
    except Exception:
        cap = 0
    if cap <= 0:
        cap = 64 * 1024 * 1024          # conservative fallback (v7x per-core VMEM)
    return min((cap * 3) // 4, 100 * 1024 * 1024)


def gru_recurrence_kernel(gi_ref, whh_ref, bhhn_ref, h_out_ref, h_scratch,
                          *, seq_len):
    """grid = (batch_blocks, time_chunks); fori_loop over steps in a chunk."""
    c = pl.program_id(1)                        # sequential time-chunk axis
    tc = gi_ref.shape[0]                        # static timesteps per chunk
    batch, hp = h_scratch.shape                 # hp is a multiple of 128

    @pl.when(c == 0)
    def _():
        h_scratch[...] = jnp.zeros_like(h_scratch)

    # Hoisted out of the serial loop (once per chunk).
    whh = whh_ref[...]                                            # [Hp, 3Hp] bf16
    bhh_n = jnp.broadcast_to(bhhn_ref[...], (batch, hp))          # [B, Hp] f32

    # Valid (non time-padded) steps in this chunk; padded steps are masked.
    n_valid = jnp.minimum(tc, seq_len - c * tc)

    def step(i, h):
        gi_t = gi_ref[i]                                          # [B, 3Hp] bf16
        gh = jnp.dot(h.astype(whh.dtype), whh,
                     preferred_element_type=jnp.float32)          # MXU bf16->f32
        # lane-aligned gate slices; bf16 gi upcasts at the add (VPU stays f32)
        r = jax.nn.sigmoid(gi_t[:, 0 * hp:1 * hp] + gh[:, 0 * hp:1 * hp])
        z = jax.nn.sigmoid(gi_t[:, 1 * hp:2 * hp] + gh[:, 1 * hp:2 * hp])
        n = jnp.tanh(gi_t[:, 2 * hp:3 * hp] + r * (gh[:, 2 * hp:3 * hp] + bhh_n))
        h_new = n + z * (h - n)                                   # 3-op blend
        return jnp.where(i < n_valid, h_new, h)

    h_new = jax.lax.fori_loop(0, tc, step, h_scratch[...],
                              unroll=min(8, tc))
    h_scratch[...] = h_new          # carry across chunks
    h_out_ref[...] = h_new          # written every chunk (no revisit reliance)


def encoder_forward(src, emb_table, w_ih, w_hh, b_ih, b_hh,
                    *, time_chunk=None, num_batch_blocks=None,
                    mxu_dtype=jnp.bfloat16):
    """src: [B, T] int32 -> hidden: [1, B, H] float32 (torch GRU `hidden`)."""
    B, T = src.shape
    V, E = emb_table.shape
    H = w_hh.shape[1]                           # torch W_hh is (3H, H)
    Hp = _round_up(max(H, 128), 128)            # lane-pad each gate
    f32 = jnp.float32
    mxu_bytes = jnp.dtype(mxu_dtype).itemsize

    # --- fold biases that commute with the gi add: b_ih + [b_hh_r, b_hh_z, 0] ---
    b_ih3 = b_ih.astype(f32).reshape(3, H)
    b_hh3 = b_hh.astype(f32).reshape(3, H)
    fold_bias = b_ih3.at[0].add(b_hh3[0]).at[1].add(b_hh3[1])     # [3, H]
    bhh_n_pad = jnp.zeros((1, Hp), f32).at[0, :H].set(b_hh3[2])   # stays in-kernel

    # --- lane-aligned input projection [E, 3Hp] and folded bias [1, 3Hp] ---
    w_ih_t = jnp.transpose(w_ih).astype(f32).reshape(E, 3, H)
    w_ih_pad = jnp.zeros((E, 3, Hp), f32).at[:, :, :H].set(w_ih_t).reshape(E, 3 * Hp)
    bias_pad = jnp.zeros((3, Hp), f32).at[:, :H].set(fold_bias).reshape(1, 3 * Hp)

    # --- gi = input gates, time-major [T, B, 3Hp], stored in bf16 -------------
    if V <= 2 * T * B:
        # Fused table: one [V,E]x[E,3Hp] matmul, then a bf16 row gather.
        G = jnp.dot(emb_table.astype(f32), w_ih_pad,
                    preferred_element_type=f32) + bias_pad        # [V, 3Hp]
        gi = G.astype(mxu_dtype)[src.T]                           # [T, B, 3Hp]
    else:
        # Large vocab: gather embeddings, single batched projection.
        x = emb_table.astype(f32)[src.T]                          # [T, B, E]
        gi = (jnp.dot(x.reshape(T * B, E), w_ih_pad,
                      preferred_element_type=f32) + bias_pad
              ).reshape(T, B, 3 * Hp).astype(mxu_dtype)

    # --- lane-aligned recurrent weights [Hp, 3Hp] in MXU dtype ---------------
    whh = jnp.transpose(w_hh).astype(f32).reshape(H, 3, H)
    whh_pad = (jnp.zeros((Hp, 3, Hp), f32).at[:H, :, :H].set(whh)
               .reshape(Hp, 3 * Hp).astype(mxu_dtype))

    # --- batch blocking (one block per v7x TensorCore when cleanly aligned) --
    if num_batch_blocks is None:
        num_batch_blocks = 2 if (B % 32 == 0) else 1
    assert B % num_batch_blocks == 0
    Bb = B // num_batch_blocks

    # --- VMEM-budget-derived time chunk ---------------------------------------
    vmem_budget = _vmem_budget_bytes()
    fixed = (2 * Hp * 3 * Hp * mxu_bytes        # whh (double-buffered resident)
             + 2 * 1 * Hp * 4                   # b_hh_n
             + Bb * Hp * 4                      # h_scratch
             + 2 * Bb * Hp * 4)                 # output block (double-buffered)
    per_step = 2 * Bb * 3 * Hp * mxu_bytes      # gi block is double-buffered
    if time_chunk is None:
        slack = max(vmem_budget - fixed, per_step)
        time_chunk = max(1, min(T, slack // per_step, 2048))
    Tc = int(max(1, min(T, time_chunk)))
    n_chunks = pl.cdiv(T, Tc)
    T_pad = n_chunks * Tc
    if T_pad != T:                              # pad time; padded steps masked in-kernel
        gi = jnp.concatenate(
            [gi, jnp.zeros((T_pad - T, B, 3 * Hp), gi.dtype)], axis=0)

    kernel = functools.partial(gru_recurrence_kernel, seq_len=T)

    h_final = pl.pallas_call(
        kernel,
        out_shape=jax.ShapeDtypeStruct((B, Hp), f32),
        grid_spec=pltpu.PrefetchScalarGridSpec(
            num_scalar_prefetch=0,
            grid=(num_batch_blocks, n_chunks),
            in_specs=[
                pl.BlockSpec((Tc, Bb, 3 * Hp), lambda b, c: (c, b, 0)),  # gi chunk
                pl.BlockSpec((Hp, 3 * Hp), lambda b, c: (0, 0)),         # W_hh^T (resident)
                pl.BlockSpec((1, Hp), lambda b, c: (0, 0)),              # b_hh_n (resident)
            ],
            out_specs=pl.BlockSpec((Bb, Hp), lambda b, c: (b, 0)),
            scratch_shapes=[pltpu.VMEM((Bb, Hp), f32)],
        ),
        compiler_params=pltpu.CompilerParams(
            dimension_semantics=("parallel", "arbitrary"),  # batch || ; time carry
            vmem_limit_bytes=int(vmem_budget),
        ),
    )(gi, whh_pad, bhh_n_pad)

    return h_final[:, :H][None]                 # [1, B, H]


def reference_forward(src, emb_table, w_ih, w_hh, b_ih, b_hh):
    """Pure-JAX f32 reference of the same GRU math (PyTorch gate order r,z,n)."""
    H = w_hh.shape[1]
    embedded = emb_table[src].astype(jnp.float32)          # [B, T, E]
    x_tm = jnp.transpose(embedded, (1, 0, 2))              # [T, B, E]
    h0 = jnp.zeros((src.shape[0], H), jnp.float32)

    def step(h, x_t):
        gi = x_t @ w_ih.T + b_ih
        gh = h @ w_hh.T + b_hh
        r = jax.nn.sigmoid(gi[:, :H] + gh[:, :H])
        z = jax.nn.sigmoid(gi[:, H:2 * H] + gh[:, H:2 * H])
        n = jnp.tanh(gi[:, 2 * H:] + r * gh[:, 2 * H:])
        return (1.0 - z) * n + z * h, None

    h_last, _ = jax.lax.scan(step, h0, x_tm)
    return h_last[None]


def _make_params(key, V, E, H):
    k_emb, k_wih, k_whh, k_bih, k_bhh = jax.random.split(key, 5)
    scale = 1.0 / jnp.sqrt(jnp.float32(H))
    emb = jax.random.normal(k_emb, (V, E), jnp.float32) * 0.1
    emb = emb.at[0].set(0.0)                                # padding_idx=0
    w_ih = jax.random.uniform(k_wih, (3 * H, E), jnp.float32, -1.0, 1.0) * scale
    w_hh = jax.random.uniform(k_whh, (3 * H, H), jnp.float32, -1.0, 1.0) * scale
    b_ih = jax.random.uniform(k_bih, (3 * H,), jnp.float32, -1.0, 1.0) * scale
    b_hh = jax.random.uniform(k_bhh, (3 * H,), jnp.float32, -1.0, 1.0) * scale
    return emb, w_ih, w_hh, b_ih, b_hh


def _run_case(key, V, E, H, B, T, **kw):
    k_src, k_par = jax.random.split(key)
    src = jax.random.randint(k_src, (B, T), 0, V, dtype=jnp.int32)
    params = _make_params(k_par, V, E, H)
    hidden = jax.block_until_ready(encoder_forward(src, *params, **kw))
    assert hidden.shape == (1, B, H)
    ref = jax.block_until_ready(reference_forward(src, *params))
    assert jnp.allclose(hidden, ref, atol=2e-2, rtol=2e-2), (
        f"mismatch vs reference (max abs err "
        f"{float(jnp.max(jnp.abs(hidden - ref))):.3e})")


if __name__ == "__main__":
    key = jax.random.PRNGKey(0)
    k1, k2, k3 = jax.random.split(key, 3)

    # Case 1: small shapes consistent with Encoder(input_dim, emb_dim, hid_dim);
    #         single chunk, single batch block, fused-table path.
    _run_case(k1, V=16, E=32, H=32, B=2, T=8)

    # Case 2: multi-chunk carry + time padding (T not a multiple of the chunk)
    #         + batch-parallel axis (B=32 -> 2 blocks of 16).
    _run_case(k2, V=50, E=24, H=48, B=32, T=37, time_chunk=16)

    # Case 3: large vocab relative to token count -> per-token projection path.
    _run_case(k3, V=1024, E=16, H=32, B=2, T=8)

    print("KERNEL_OK")
</pallas_src>

<mosaic_0001>
module attributes {stable_mosaic.version = 11 : i64} {
  func.func @gru_recurrence_kernel(%arg0: i32, %arg1: i32, %arg2: memref<8x2x384xbf16, #tpu.memory_space<vmem>>, %arg3: memref<128x384xbf16, #tpu.memory_space<vmem>>, %arg4: memref<1x128xf32, #tpu.memory_space<vmem>>, %arg5: memref<2x128xf32, #tpu.memory_space<vmem>>, %arg6: memref<2x128xf32, #tpu.memory_space<vmem>>) attributes {dimension_semantics = [#tpu.dimension_semantics<parallel>, #tpu.dimension_semantics<arbitrary>], iteration_bounds = array<i64: 1, 1>, scalar_prefetch = 0 : i64, scratch_operands = 1 : i64, tpu.core_type = #tpu.core_type<tc>, window_params = [{transform_indices = @transform_0, window_bounds = array<i64: 8, 2, 384>}, {pipeline_mode = #tpu.pipeline_mode<synchronous>, transform_indices = @transform_1, window_bounds = array<i64: 128, 384>}, {pipeline_mode = #tpu.pipeline_mode<synchronous>, transform_indices = @transform_2, window_bounds = array<i64: 1, 128>}, {transform_indices = @transform_3, window_bounds = array<i64: 2, 128>}]} {
    %c0_i32 = arith.constant 0 : i32
    %0 = arith.cmpi eq, %arg1, %c0_i32 : i32
    %1 = arith.extui %0 : i1 to i32
    %c0_i32_0 = arith.constant 0 : i32
    %2 = arith.cmpi ne, %1, %c0_i32_0 : i32
    scf.if %2 {
      %cst_53 = arith.constant 0.000000e+00 : f32
      %293 = vector.broadcast %cst_53 : f32 to vector<2x128xf32>
      %c0_54 = arith.constant 0 : index
      %c0_55 = arith.constant 0 : index
      %294 = vector.load %arg6[%c0_54, %c0_55] : memref<2x128xf32, #tpu.memory_space<vmem>>, vector<2x128xf32>
      tpu.vector_store %arg6[%c0_54, %c0_55], %293 {strides = array<i32>} : memref<2x128xf32, #tpu.memory_space<vmem>>, vector<2x128xf32>,
    } else {
    }
    %c0 = arith.constant 0 : index
    %c0_1 = arith.constant 0 : index
    %3 = vector.load %arg3[%c0, %c0_1] : memref<128x384xbf16, #tpu.memory_space<vmem>>, vector<128x384xbf16>
    %c0_2 = arith.constant 0 : index
    %c0_3 = arith.constant 0 : index
    %4 = vector.load %arg4[%c0_2, %c0_3] : memref<1x128xf32, #tpu.memory_space<vmem>>, vector<1x128xf32>
    %5 = vector.shape_cast %4 : vector<1x128xf32> to vector<1x128xf32>
    %6 = vector.broadcast %5 : vector<1x128xf32> to vector<2x128xf32>
    %c8_i32 = arith.constant 8 : i32
    %7 = arith.muli %arg1, %c8_i32 : i32
    %c8_i32_4 = arith.constant 8 : i32
    %8 = arith.subi %c8_i32_4, %7 : i32
    %c8_i32_5 = arith.constant 8 : i32
    %9 = arith.minsi %c8_i32_5, %8 : i32
    %c0_6 = arith.constant 0 : index
    %c0_7 = arith.constant 0 : index
    %10 = vector.load %arg6[%c0_6, %c0_7] : memref<2x128xf32, #tpu.memory_space<vmem>>, vector<2x128xf32>
    %c0_i32_8 = arith.constant 0 : i32
    %11 = arith.index_cast %c0_i32_8 : i32 to index
    %c0_9 = arith.constant 0 : index
    %c0_10 = arith.constant 0 : index
    %12 = vector.load %arg2[%11, %c0_9, %c0_10] : memref<8x2x384xbf16, #tpu.memory_space<vmem>>, vector<1x2x384xbf16>
    %13 = vector.shape_cast %12 : vector<1x2x384xbf16> to vector<2x384xbf16>
    %14 = arith.truncf %10 : vector<2x128xf32> to vector<2x128xbf16>
    %cst = arith.constant dense<0.000000e+00> : vector<2x384xf32>
    %15 = tpu.matmul %14, %3, %cst {dimension_numbers = #tpu.dot_dimension_numbers<[1], [0], [0], [1], [0, 0, 1, 1], [], []>} : vector<2x128xbf16>, vector<128x384xbf16>, vector<2x384xf32> -> vector<2x384xf32>
    %16 = vector.extract_strided_slice %13 {offsets = [0, 0], sizes = [2, 128], strides = [1, 1]} : vector<2x384xbf16> to vector<2x128xbf16>
    %17 = vector.extract_strided_slice %15 {offsets = [0, 0], sizes = [2, 128], strides = [1, 1]} : vector<2x384xf32> to vector<2x128xf32>
    %18 = arith.extf %16 : vector<2x128xbf16> to vector<2x128xf32>
    %19 = arith.addf %18, %17 : vector<2x128xf32>
    %20 = arith.negf %19 : vector<2x128xf32>
    %21 = math.exp %20 : vector<2x128xf32>
    %cst_11 = arith.constant 1.000000e+00 : f32
    %22 = vector.broadcast %cst_11 : f32 to vector<2x128xf32>
    %23 = arith.addf %22, %21 : vector<2x128xf32>
    %24 = arith.divf %22, %23 : vector<2x128xf32>
    %25 = vector.extract_strided_slice %13 {offsets = [0, 128], sizes = [2, 128], strides = [1, 1]} : vector<2x384xbf16> to vector<2x128xbf16>
    %26 = vector.extract_strided_slice %15 {offsets = [0, 128], sizes = [2, 128], strides = [1, 1]} : vector<2x384xf32> to vector<2x128xf32>
    %27 = arith.extf %25 : vector<2x128xbf16> to vector<2x128xf32>
    %28 = arith.addf %27, %26 : vector<2x128xf32>
    %29 = arith.negf %28 : vector<2x128xf32>
    %30 = math.exp %29 : vector<2x128xf32>
    %cst_12 = arith.constant 1.000000e+00 : f32
    %31 = vector.broadcast %cst_12 : f32 to vector<2x128xf32>
    %32 = arith.addf %31, %30 : vector<2x128xf32>
    %33 = arith.divf %31, %32 : vector<2x128xf32>
    %34 = vector.extract_strided_slice %13 {offsets = [0, 256], sizes = [2, 128], strides = [1, 1]} : vector<2x384xbf16> to vector<2x128xbf16>
    %35 = vector.extract_strided_slice %15 {offsets = [0, 256], sizes = [2, 128], strides = [1, 1]} : vector<2x384xf32> to vector<2x128xf32>
    %36 = arith.addf %35, %6 : vector<2x128xf32>
    %37 = arith.mulf %24, %36 : vector<2x128xf32>
    %38 = arith.extf %34 : vector<2x128xbf16> to vector<2x128xf32>
    %39 = arith.addf %38, %37 : vector<2x128xf32>
    %40 = math.tanh %39 : vector<2x128xf32>
    %41 = arith.subf %10, %40 : vector<2x128xf32>
    %42 = arith.mulf %33, %41 : vector<2x128xf32>
    %43 = arith.addf %40, %42 : vector<2x128xf32>
    %44 = arith.cmpi slt, %c0_i32_8, %9 : i32
    %45 = arith.select %44, %43, %10 : vector<2x128xf32>
    %c1_i32 = arith.constant 1 : i32
    %46 = arith.index_cast %c1_i32 : i32 to index
    %c0_13 = arith.constant 0 : index
    %c0_14 = arith.constant 0 : index
    %47 = vector.load %arg2[%46, %c0_13, %c0_14] : memref<8x2x384xbf16, #tpu.memory_space<vmem>>, vector<1x2x384xbf16>
    %48 = vector.shape_cast %47 : vector<1x2x384xbf16> to vector<2x384xbf16>
    %49 = arith.truncf %45 : vector<2x128xf32> to vector<2x128xbf16>
    %cst_15 = arith.constant dense<0.000000e+00> : vector<2x384xf32>
    %50 = tpu.matmul %49, %3, %cst_15 {dimension_numbers = #tpu.dot_dimension_numbers<[1], [0], [0], [1], [0, 0, 1, 1], [], []>} : vector<2x128xbf16>, vector<128x384xbf16>, vector<2x384xf32> -> vector<2x384xf32>
    %51 = vector.extract_strided_slice %48 {offsets = [0, 0], sizes = [2, 128], strides = [1, 1]} : vector<2x384xbf16> to vector<2x128xbf16>
    %52 = vector.extract_strided_slice %50 {offsets = [0, 0], sizes = [2, 128], strides = [1, 1]} : vector<2x384xf32> to vector<2x128xf32>
    %53 = arith.extf %51 : vector<2x128xbf16> to vector<2x128xf32>
    %54 = arith.addf %53, %52 : vector<2x128xf32>
    %55 = arith.negf %54 : vector<2x128xf32>
    %56 = math.exp %55 : vector<2x128xf32>
    %cst_16 = arith.constant 1.000000e+00 : f32
    %57 = vector.broadcast %cst_16 : f32 to vector<2x128xf32>
    %58 = arith.addf %57, %56 : vector<2x128xf32>
    %59 = arith.divf %57, %58 : vector<2x128xf32>
    %60 = vector.extract_strided_slice %48 {offsets = [0, 128], sizes = [2, 128], strides = [1, 1]} : vector<2x384xbf16> to vector<2x128xbf16>
    %61 = vector.extract_strided_slice %50 {offsets = [0, 128], sizes = [2, 128], strides = [1, 1]} : vector<2x384xf32> to vector<2x128xf32>
    %62 = arith.extf %60 : vector<2x128xbf16> to vector<2x128xf32>
    %63 = arith.addf %62, %61 : vector<2x128xf32>
    %64 = arith.negf %63 : vector<2x128xf32>
    %65 = math.exp %64 : vector<2x128xf32>
    %cst_17 = arith.constant 1.000000e+00 : f32
    %66 = vector.broadcast %cst_17 : f32 to vector<2x128xf32>
    %67 = arith.addf %66, %65 : vector<2x128xf32>
    %68 = arith.divf %66, %67 : vector<2x128xf32>
    %69 = vector.extract_strided_slice %48 {offsets = [0, 256], sizes = [2, 128], strides = [1, 1]} : vector<2x384xbf16> to vector<2x128xbf16>
    %70 = vector.extract_strided_slice %50 {offsets = [0, 256], sizes = [2, 128], strides = [1, 1]} : vector<2x384xf32> to vector<2x128xf32>
    %71 = arith.addf %70, %6 : vector<2x128xf32>
    %72 = arith.mulf %59, %71 : vector<2x128xf32>
    %73 = arith.extf %69 : vector<2x128xbf16> to vector<2x128xf32>
    %74 = arith.addf %73, %72 : vector<2x128xf32>
    %75 = math.tanh %74 : vector<2x128xf32>
    %76 = arith.subf %45, %75 : vector<2x128xf32>
    %77 = arith.mulf %68, %76 : vector<2x128xf32>
    %78 = arith.addf %75, %77 : vector<2x128xf32>
    %79 = arith.cmpi slt, %c1_i32, %9 : i32
    %80 = arith.select %79, %78, %45 : vector<2x128xf32>
    %c2_i32 = arith.constant 2 : i32
    %81 = arith.index_cast %c2_i32 : i32 to index
    %c0_18 = arith.constant 0 : index
    %c0_19 = arith.constant 0 : index
    %82 = vector.load %arg2[%81, %c0_18, %c0_19] : memref<8x2x384xbf16, #tpu.memory_space<vmem>>, vector<1x2x384xbf16>
    %83 = vector.shape_cast %82 : vector<1x2x384xbf16> to vector<2x384xbf16>
    %84 = arith.truncf %80 : vector<2x128xf32> to vector<2x128xbf16>
    %cst_20 = arith.constant dense<0.000000e+00> : vector<2x384xf32>
    %85 = tpu.matmul %84, %3, %cst_20 {dimension_numbers = #tpu.dot_dimension_numbers<[1], [0], [0], [1], [0, 0, 1, 1], [], []>} : vector<2x128xbf16>, vector<128x384xbf16>, vector<2x384xf32> -> vector<2x384xf32>
    %86 = vector.extract_strided_slice %83 {offsets = [0, 0], sizes = [2, 128], strides = [1, 1]} : vector<2x384xbf16> to vector<2x128xbf16>
    %87 = vector.extract_strided_slice %85 {offsets = [0, 0], sizes = [2, 128], strides = [1, 1]} : vector<2x384xf32> to vector<2x128xf32>
    %88 = arith.extf %86 : vector<2x128xbf16> to vector<2x128xf32>
    %89 = arith.addf %88, %87 : vector<2x128xf32>
    %90 = arith.negf %89 : vector<2x128xf32>
    %91 = math.exp %90 : vector<2x128xf32>
    %cst_21 = arith.constant 1.000000e+00 : f32
    %92 = vector.broadcast %cst_21 : f32 to vector<2x128xf32>
    %93 = arith.addf %92, %91 : vector<2x128xf32>
    %94 = arith.divf %92, %93 : vector<2x128xf32>
    %95 = vector.extract_strided_slice %83 {offsets = [0, 128], sizes = [2, 128], strides = [1, 1]} : vector<2x384xbf16> to vector<2x128xbf16>
    %96 = vector.extract_strided_slice %85 {offsets = [0, 128], sizes = [2, 128], strides = [1, 1]} : vector<2x384xf32> to vector<2x128xf32>
    %97 = arith.extf %95 : vector<2x128xbf16> to vector<2x128xf32>
    %98 = arith.addf %97, %96 : vector<2x128xf32>
    %99 = arith.negf %98 : vector<2x128xf32>
    %100 = math.exp %99 : vector<2x128xf32>
    %cst_22 = arith.constant 1.000000e+00 : f32
    %101 = vector.broadcast %cst_22 : f32 to vector<2x128xf32>
    %102 = arith.addf %101, %100 : vector<2x128xf32>
    %103 = arith.divf %101, %102 : vector<2x128xf32>
    %104 = vector.extract_strided_slice %83 {offsets = [0, 256], sizes = [2, 128], strides = [1, 1]} : vector<2x384xbf16> to vector<2x128xbf16>
    %105 = vector.extract_strided_slice %85 {offsets = [0, 256], sizes = [2, 128], strides = [1, 1]} : vector<2x384xf32> to vector<2x128xf32>
    %106 = arith.addf %105, %6 : vector<2x128xf32>
    %107 = arith.mulf %94, %106 : vector<2x128xf32>
    %108 = arith.extf %104 : vector<2x128xbf16> to vector<2x128xf32>
    %109 = arith.addf %108, %107 : vector<2x128xf32>
    %110 = math.tanh %109 : vector<2x128xf32>
    %111 = arith.subf %80, %110 : vector<2x128xf32>
    %112 = arith.mulf %103, %111 : vector<2x128xf32>
    %113 = arith.addf %110, %112 : vector<2x128xf32>
    %114 = arith.cmpi slt, %c2_i32, %9 : i32
    %115 = arith.select %114, %113, %80 : vector<2x128xf32>
    %c3_i32 = arith.constant 3 : i32
    %116 = arith.index_cast %c3_i32 : i32 to index
    %c0_23 = arith.constant 0 : index
    %c0_24 = arith.constant 0 : index
    %117 = vector.load %arg2[%116, %c0_23, %c0_24] : memref<8x2x384xbf16, #tpu.memory_space<vmem>>, vector<1x2x384xbf16>
    %118 = vector.shape_cast %117 : vector<1x2x384xbf16> to vector<2x384xbf16>
    %119 = arith.truncf %115 : vector<2x128xf32> to vector<2x128xbf16>
    %cst_25 = arith.constant dense<0.000000e+00> : vector<2x384xf32>
    %120 = tpu.matmul %119, %3, %cst_25 {dimension_numbers = #tpu.dot_dimension_numbers<[1], [0], [0], [1], [0, 0, 1, 1], [], []>} : vector<2x128xbf16>, vector<128x384xbf16>, vector<2x384xf32> -> vector<2x384xf32>
    %121 = vector.extract_strided_slice %118 {offsets = [0, 0], sizes = [2, 128], strides = [1, 1]} : vector<2x384xbf16> to vector<2x128xbf16>
    %122 = vector.extract_strided_slice %120 {offsets = [0, 0], sizes = [2, 128], strides = [1, 1]} : vector<2x384xf32> to vector<2x128xf32>
    %123 = arith.extf %121 : vector<2x128xbf16> to vector<2x128xf32>
    %124 = arith.addf %123, %122 : vector<2x128xf32>
    %125 = arith.negf %124 : vector<2x128xf32>
    %126 = math.exp %125 : vector<2x128xf32>
    %cst_26 = arith.constant 1.000000e+00 : f32
    %127 = vector.broadcast %cst_26 : f32 to vector<2x128xf32>
    %128 = arith.addf %127, %126 : vector<2x128xf32>
    %129 = arith.divf %127, %128 : vector<2x128xf32>
    %130 = vector.extract_strided_slice %118 {offsets = [0, 128], sizes = [2, 128], strides = [1, 1]} : vector<2x384xbf16> to vector<2x128xbf16>
    %131 = vector.extract_strided_slice %120 {offsets = [0, 128], sizes = [2, 128], strides = [1, 1]} : vector<2x384xf32> to vector<2x128xf32>
    %132 = arith.extf %130 : vector<2x128xbf16> to vector<2x128xf32>
    %133 = arith.addf %132, %131 : vector<2x128xf32>
    %134 = arith.negf %133 : vector<2x128xf32>
    %135 = math.exp %134 : vector<2x128xf32>
    %cst_27 = arith.constant 1.000000e+00 : f32
    %136 = vector.broadcast %cst_27 : f32 to vector<2x128xf32>
    %137 = arith.addf %136, %135 : vector<2x128xf32>
    %138 = arith.divf %136, %137 : vector<2x128xf32>
    %139 = vector.extract_strided_slice %118 {offsets = [0, 256], sizes = [2, 128], strides = [1, 1]} : vector<2x384xbf16> to vector<2x128xbf16>
    %140 = vector.extract_strided_slice %120 {offsets = [0, 256], sizes = [2, 128], strides = [1, 1]} : vector<2x384xf32> to vector<2x128xf32>
    %141 = arith.addf %140, %6 : vector<2x128xf32>
    %142 = arith.mulf %129, %141 : vector<2x128xf32>
    %143 = arith.extf %139 : vector<2x128xbf16> to vector<2x128xf32>
    %144 = arith.addf %143, %142 : vector<2x128xf32>
    %145 = math.tanh %144 : vector<2x128xf32>
    %146 = arith.subf %115, %145 : vector<2x128xf32>
    %147 = arith.mulf %138, %146 : vector<2x128xf32>
    %148 = arith.addf %145, %147 : vector<2x128xf32>
    %149 = arith.cmpi slt, %c3_i32, %9 : i32
    %150 = arith.select %149, %148, %115 : vector<2x128xf32>
    %c4_i32 = arith.constant 4 : i32
    %151 = arith.index_cast %c4_i32 : i32 to index
    %c0_28 = arith.constant 0 : index
    %c0_29 = arith.constant 0 : index
    %152 = vector.load %arg2[%151, %c0_28, %c0_29] : memref<8x2x384xbf16, #tpu.memory_space<vmem>>, vector<1x2x384xbf16>
    %153 = vector.shape_cast %152 : vector<1x2x384xbf16> to vector<2x384xbf16>
    %154 = arith.truncf %150 : vector<2x128xf32> to vector<2x128xbf16>
    %cst_30 = arith.constant dense<0.000000e+00> : vector<2x384xf32>
    %155 = tpu.matmul %154, %3, %cst_30 {dimension_numbers = #tpu.dot_dimension_numbers<[1], [0], [0], [1], [0, 0, 1, 1], [], []>} : vector<2x128xbf16>, vector<128x384xbf16>, vector<2x384xf32> -> vector<2x384xf32>
    %156 = vector.extract_strided_slice %153 {offsets = [0, 0], sizes = [2, 128], strides = [1, 1]} : vector<2x384xbf16> to vector<2x128xbf16>
    %157 = vector.extract_strided_slice %155 {offsets = [0, 0], sizes = [2, 128], strides = [1, 1]} : vector<2x384xf32> to vector<2x128xf32>
    %158 = arith.extf %156 : vector<2x128xbf16> to vector<2x128xf32>
    %159 = arith.addf %158, %157 : vector<2x128xf32>
    %160 = arith.negf %159 : vector<2x128xf32>
    %161 = math.exp %160 : vector<2x128xf32>
    %cst_31 = arith.constant 1.000000e+00 : f32
    %162 = vector.broadcast %cst_31 : f32 to vector<2x128xf32>
    %163 = arith.addf %162, %161 : vector<2x128xf32>
    %164 = arith.divf %162, %163 : vector<2x128xf32>
    %165 = vector.extract_strided_slice %153 {offsets = [0, 128], sizes = [2, 128], strides = [1, 1]} : vector<2x384xbf16> to vector<2x128xbf16>
    %166 = vector.extract_strided_slice %155 {offsets = [0, 128], sizes = [2, 128], strides = [1, 1]} : vector<2x384xf32> to vector<2x128xf32>
    %167 = arith.extf %165 : vector<2x128xbf16> to vector<2x128xf32>
    %168 = arith.addf %167, %166 : vector<2x128xf32>
    %169 = arith.negf %168 : vector<2x128xf32>
    %170 = math.exp %169 : vector<2x128xf32>
    %cst_32 = arith.constant 1.000000e+00 : f32
    %171 = vector.broadcast %cst_32 : f32 to vector<2x128xf32>
    %172 = arith.addf %171, %170 : vector<2x128xf32>
    %173 = arith.divf %171, %172 : vector<2x128xf32>
    %174 = vector.extract_strided_slice %153 {offsets = [0, 256], sizes = [2, 128], strides = [1, 1]} : vector<2x384xbf16> to vector<2x128xbf16>
    %175 = vector.extract_strided_slice %155 {offsets = [0, 256], sizes = [2, 128], strides = [1, 1]} : vector<2x384xf32> to vector<2x128xf32>
    %176 = arith.addf %175, %6 : vector<2x128xf32>
    %177 = arith.mulf %164, %176 : vector<2x128xf32>
    %178 = arith.extf %174 : vector<2x128xbf16> to vector<2x128xf32>
    %179 = arith.addf %178, %177 : vector<2x128xf32>
    %180 = math.tanh %179 : vector<2x128xf32>
    %181 = arith.subf %150, %180 : vector<2x128xf32>
    %182 = arith.mulf %173, %181 : vector<2x128xf32>
    %183 = arith.addf %180, %182 : vector<2x128xf32>
    %184 = arith.cmpi slt, %c4_i32, %9 : i32
    %185 = arith.select %184, %183, %150 : vector<2x128xf32>
    %c5_i32 = arith.constant 5 : i32
    %186 = arith.index_cast %c5_i32 : i32 to index
    %c0_33 = arith.constant 0 : index
    %c0_34 = arith.constant 0 : index
    %187 = vector.load %arg2[%186, %c0_33, %c0_34] : memref<8x2x384xbf16, #tpu.memory_space<vmem>>, vector<1x2x384xbf16>
    %188 = vector.shape_cast %187 : vector<1x2x384xbf16> to vector<2x384xbf16>
    %189 = arith.truncf %185 : vector<2x128xf32> to vector<2x128xbf16>
    %cst_35 = arith.constant dense<0.000000e+00> : vector<2x384xf32>
    %190 = tpu.matmul %189, %3, %cst_35 {dimension_numbers = #tpu.dot_dimension_numbers<[1], [0], [0], [1], [0, 0, 1, 1], [], []>} : vector<2x128xbf16>, vector<128x384xbf16>, vector<2x384xf32> -> vector<2x384xf32>
    %191 = vector.extract_strided_slice %188 {offsets = [0, 0], sizes = [2, 128], strides = [1, 1]} : vector<2x384xbf16> to vector<2x128xbf16>
    %192 = vector.extract_strided_slice %190 {offsets = [0, 0], sizes = [2, 128], strides = [1, 1]} : vector<2x384xf32> to vector<2x128xf32>
    %193 = arith.extf %191 : vector<2x128xbf16> to vector<2x128xf32>
    %194 = arith.addf %193, %192 : vector<2x128xf32>
    %195 = arith.negf %194 : vector<2x128xf32>
    %196 = math.exp %195 : vector<2x128xf32>
    %cst_36 = arith.constant 1.000000e+00 : f32
    %197 = vector.broadcast %cst_36 : f32 to vector<2x128xf32>
    %198 = arith.addf %197, %196 : vector<2x128xf32>
    %199 = arith.divf %197, %198 : vector<2x128xf32>
    %200 = vector.extract_strided_slice %188 {offsets = [0, 128], sizes = [2, 128], strides = [1, 1]} : vector<2x384xbf16> to vector<2x128xbf16>
    %201 = vector.extract_strided_slice %190 {offsets = [0, 128], sizes = [2, 128], strides = [1, 1]} : vector<2x384xf32> to vector<2x128xf32>
    %202 = arith.extf %200 : vector<2x128xbf16> to vector<2x128xf32>
    %203 = arith.addf %202, %201 : vector<2x128xf32>
    %204 = arith.negf %203 : vector<2x128xf32>
    %205 = math.exp %204 : vector<2x128xf32>
    %cst_37 = arith.constant 1.000000e+00 : f32
    %206 = vector.broadcast %cst_37 : f32 to vector<2x128xf32>
    %207 = arith.addf %206, %205 : vector<2x128xf32>
    %208 = arith.divf %206, %207 : vector<2x128xf32>
    %209 = vector.extract_strided_slice %188 {offsets = [0, 256], sizes = [2, 128], strides = [1, 1]} : vector<2x384xbf16> to vector<2x128xbf16>
    %210 = vector.extract_strided_slice %190 {offsets = [0, 256], sizes = [2, 128], strides = [1, 1]} : vector<2x384xf32> to vector<2x128xf32>
    %211 = arith.addf %210, %6 : vector<2x128xf32>
    %212 = arith.mulf %199, %211 : vector<2x128xf32>
    %213 = arith.extf %209 : vector<2x128xbf16> to vector<2x128xf32>
    %214 = arith.addf %213, %212 : vector<2x128xf32>
    %215 = math.tanh %214 : vector<2x128xf32>
    %216 = arith.subf %185, %215 : vector<2x128xf32>
    %217 = arith.mulf %208, %216 : vector<2x128xf32>
    %218 = arith.addf %215, %217 : vector<2x128xf32>
    %219 = arith.cmpi slt, %c5_i32, %9 : i32
    %220 = arith.select %219, %218, %185 : vector<2x128xf32>
    %c6_i32 = arith.constant 6 : i32
    %221 = arith.index_cast %c6_i32 : i32 to index
    %c0_38 = arith.constant 0 : index
    %c0_39 = arith.constant 0 : index
    %222 = vector.load %arg2[%221, %c0_38, %c0_39] : memref<8x2x384xbf16, #tpu.memory_space<vmem>>, vector<1x2x384xbf16>
    %223 = vector.shape_cast %222 : vector<1x2x384xbf16> to vector<2x384xbf16>
    %224 = arith.truncf %220 : vector<2x128xf32> to vector<2x128xbf16>
    %cst_40 = arith.constant dense<0.000000e+00> : vector<2x384xf32>
    %225 = tpu.matmul %224, %3, %cst_40 {dimension_numbers = #tpu.dot_dimension_numbers<[1], [0], [0], [1], [0, 0, 1, 1], [], []>} : vector<2x128xbf16>, vector<128x384xbf16>, vector<2x384xf32> -> vector<2x384xf32>
    %226 = vector.extract_strided_slice %223 {offsets = [0, 0], sizes = [2, 128], strides = [1, 1]} : vector<2x384xbf16> to vector<2x128xbf16>
    %227 = vector.extract_strided_slice %225 {offsets = [0, 0], sizes = [2, 128], strides = [1, 1]} : vector<2x384xf32> to vector<2x128xf32>
    %228 = arith.extf %226 : vector<2x128xbf16> to vector<2x128xf32>
    %229 = arith.addf %228, %227 : vector<2x128xf32>
    %230 = arith.negf %229 : vector<2x128xf32>
    %231 = math.exp %230 : vector<2x128xf32>
    %cst_41 = arith.constant 1.000000e+00 : f32
    %232 = vector.broadcast %cst_41 : f32 to vector<2x128xf32>
    %233 = arith.addf %232, %231 : vector<2x128xf32>
    %234 = arith.divf %232, %233 : vector<2x128xf32>
    %235 = vector.extract_strided_slice %223 {offsets = [0, 128], sizes = [2, 128], strides = [1, 1]} : vector<2x384xbf16> to vector<2x128xbf16>
    %236 = vector.extract_strided_slice %225 {offsets = [0, 128], sizes = [2, 128], strides = [1, 1]} : vector<2x384xf32> to vector<2x128xf32>
    %237 = arith.extf %235 : vector<2x128xbf16> to vector<2x128xf32>
    %238 = arith.addf %237, %236 : vector<2x128xf32>
    %239 = arith.negf %238 : vector<2x128xf32>
    %240 = math.exp %239 : vector<2x128xf32>
    %cst_42 = arith.constant 1.000000e+00 : f32
    %241 = vector.broadcast %cst_42 : f32 to vector<2x128xf32>
    %242 = arith.addf %241, %240 : vector<2x128xf32>
    %243 = arith.divf %241, %242 : vector<2x128xf32>
    %244 = vector.extract_strided_slice %223 {offsets = [0, 256], sizes = [2, 128], strides = [1, 1]} : vector<2x384xbf16> to vector<2x128xbf16>
    %245 = vector.extract_strided_slice %225 {offsets = [0, 256], sizes = [2, 128], strides = [1, 1]} : vector<2x384xf32> to vector<2x128xf32>
    %246 = arith.addf %245, %6 : vector<2x128xf32>
    %247 = arith.mulf %234, %246 : vector<2x128xf32>
    %248 = arith.extf %244 : vector<2x128xbf16> to vector<2x128xf32>
    %249 = arith.addf %248, %247 : vector<2x128xf32>
    %250 = math.tanh %249 : vector<2x128xf32>
    %251 = arith.subf %220, %250 : vector<2x128xf32>
    %252 = arith.mulf %243, %251 : vector<2x128xf32>
    %253 = arith.addf %250, %252 : vector<2x128xf32>
    %254 = arith.cmpi slt, %c6_i32, %9 : i32
    %255 = arith.select %254, %253, %220 : vector<2x128xf32>
    %c7_i32 = arith.constant 7 : i32
    %256 = arith.index_cast %c7_i32 : i32 to index
    %c0_43 = arith.constant 0 : index
    %c0_44 = arith.constant 0 : index
    %257 = vector.load %arg2[%256, %c0_43, %c0_44] : memref<8x2x384xbf16, #tpu.memory_space<vmem>>, vector<1x2x384xbf16>
    %258 = vector.shape_cast %257 : vector<1x2x384xbf16> to vector<2x384xbf16>
    %259 = arith.truncf %255 : vector<2x128xf32> to vector<2x128xbf16>
    %cst_45 = arith.constant dense<0.000000e+00> : vector<2x384xf32>
    %260 = tpu.matmul %259, %3, %cst_45 {dimension_numbers = #tpu.dot_dimension_numbers<[1], [0], [0], [1], [0, 0, 1, 1], [], []>} : vector<2x128xbf16>, vector<128x384xbf16>, vector<2x384xf32> -> vector<2x384xf32>
    %261 = vector.extract_strided_slice %258 {offsets = [0, 0], sizes = [2, 128], strides = [1, 1]} : vector<2x384xbf16> to vector<2x128xbf16>
    %262 = vector.extract_strided_slice %260 {offsets = [0, 0], sizes = [2, 128], strides = [1, 1]} : vector<2x384xf32> to vector<2x128xf32>
    %263 = arith.extf %261 : vector<2x128xbf16> to vector<2x128xf32>
    %264 = arith.addf %263, %262 : vector<2x128xf32>
    %265 = arith.negf %264 : vector<2x128xf32>
    %266 = math.exp %265 : vector<2x128xf32>
    %cst_46 = arith.constant 1.000000e+00 : f32
    %267 = vector.broadcast %cst_46 : f32 to vector<2x128xf32>
    %268 = arith.addf %267, %266 : vector<2x128xf32>
    %269 = arith.divf %267, %268 : vector<2x128xf32>
    %270 = vector.extract_strided_slice %258 {offsets = [0, 128], sizes = [2, 128], strides = [1, 1]} : vector<2x384xbf16> to vector<2x128xbf16>
    %271 = vector.extract_strided_slice %260 {offsets = [0, 128], sizes = [2, 128], strides = [1, 1]} : vector<2x384xf32> to vector<2x128xf32>
    %272 = arith.extf %270 : vector<2x128xbf16> to vector<2x128xf32>
    %273 = arith.addf %272, %271 : vector<2x128xf32>
    %274 = arith.negf %273 : vector<2x128xf32>
    %275 = math.exp %274 : vector<2x128xf32>
    %cst_47 = arith.constant 1.000000e+00 : f32
    %276 = vector.broadcast %cst_47 : f32 to vector<2x128xf32>
    %277 = arith.addf %276, %275 : vector<2x128xf32>
    %278 = arith.divf %276, %277 : vector<2x128xf32>
    %279 = vector.extract_strided_slice %258 {offsets = [0, 256], sizes = [2, 128], strides = [1, 1]} : vector<2x384xbf16> to vector<2x128xbf16>
    %280 = vector.extract_strided_slice %260 {offsets = [0, 256], sizes = [2, 128], strides = [1, 1]} : vector<2x384xf32> to vector<2x128xf32>
    %281 = arith.addf %280, %6 : vector<2x128xf32>
    %282 = arith.mulf %269, %281 : vector<2x128xf32>
    %283 = arith.extf %279 : vector<2x128xbf16> to vector<2x128xf32>
    %284 = arith.addf %283, %282 : vector<2x128xf32>
    %285 = math.tanh %284 : vector<2x128xf32>
    %286 = arith.subf %255, %285 : vector<2x128xf32>
    %287 = arith.mulf %278, %286 : vector<2x128xf32>
    %288 = arith.addf %285, %287 : vector<2x128xf32>
    %289 = arith.cmpi slt, %c7_i32, %9 : i32
    %290 = arith.select %289, %288, %255 : vector<2x128xf32>
    %c8_i32_48 = arith.constant 8 : i32
    %c0_49 = arith.constant 0 : index
    %c0_50 = arith.constant 0 : index
    %291 = vector.load %arg6[%c0_49, %c0_50] : memref<2x128xf32, #tpu.memory_space<vmem>>, vector<2x128xf32>
    tpu.vector_store %arg6[%c0_49, %c0_50], %290 {strides = array<i32>} : memref<2x128xf32, #tpu.memory_space<vmem>>, vector<2x128xf32>,
    %c0_51 = arith.constant 0 : index
    %c0_52 = arith.constant 0 : index
    %292 = vector.load %arg5[%c0_51, %c0_52] : memref<2x128xf32, #tpu.memory_space<vmem>>, vector<2x128xf32>
    tpu.vector_store %arg5[%c0_51, %c0_52], %290 {strides = array<i32>} : memref<2x128xf32, #tpu.memory_space<vmem>>, vector<2x128xf32>,
    return
  }
  func.func @transform_0(%arg0: i32, %arg1: i32) -> (i32, i32, i32) {
    %c0_i32 = arith.constant 0 : i32
    %c0_i32_0 = arith.constant 0 : i32
    return %arg1, %arg0, %c0_i32 : i32, i32, i32
  }
  func.func @transform_1(%arg0: i32, %arg1: i32) -> (i32, i32) {
    %c0_i32 = arith.constant 0 : i32
    %c0_i32_0 = arith.constant 0 : i32
    %c0_i32_1 = arith.constant 0 : i32
    return %c0_i32, %c0_i32_0 : i32, i32
  }
  func.func @transform_2(%arg0: i32, %arg1: i32) -> (i32, i32) {
    %c0_i32 = arith.constant 0 : i32
    %c0_i32_0 = arith.constant 0 : i32
    %c0_i32_1 = arith.constant 0 : i32
    return %c0_i32, %c0_i32_0 : i32, i32
  }
  func.func @transform_3(%arg0: i32, %arg1: i32) -> (i32, i32) {
    %c0_i32 = arith.constant 0 : i32
    %c0_i32_0 = arith.constant 0 : i32
    return %arg0, %c0_i32 : i32, i32
  }
}

</mosaic_0001>

<bundles_post_ra>
// kernel: tpu_custom_call.1
= control target key start
LH: loop header
LB: loop body
LE: loop exit
PB: predicated region body
PF: predicated region fallthrough
CT: control target
= control target key end

     0   :  { %8 = vsyncpa [#allocation4], 0  ;;  %s2092_s0 = inlined_call_operand.hbm [shape: bf16[8,2,384], index: 0, kind: input, shape index: {}]   ;;  %s2093_s1 = inlined_call_operand.hbm [shape: bf16[128,384], index: 1, kind: input, shape index: {}]   ;;  %s2094_s2 = inlined_call_operand.vmem [shape: f32[1,128], index: 2, kind: input, shape index: {}]   ;;  %s2095_s3 = inlined_call_operand.hbm [shape: f32[2,128], index: 3, kind: output, shape index: {}]  }
   0x1   :  { %9 = vsyncpa [#allocation7], 0 }
   0x2   :  { %10 = vsyncpa [#allocation5], 0  ;;  %s1656_s12 = smov [#allocation3]   ;;  %s1584_s16 = scalar_lea.hbm %s2092_s0, 384 }
   0x3   :  { %s16_s13 = sshll.u32 %s1656_s12, 4  ;;  %p1585_p0 = scmp.ne.s32.totalorder %s2092_s0, %s1584_s16  ;;  %s17_s13 = int_to_ptr.vmem [resolvable:$true] %s16_s13 }
   0x4   :  { %p1588_p1 = scmp.lt.u32.totalorder %s1584_s16, %s2092_s0 }
   0x6   :  { %p1590_p2 = pnand %p1588_p1, %p1585_p0 }
   0x8   :  { %1593 = shalt.err (!%p1590_p2)
}
   0x9   :  { %s1594_s21 = scalar_lea.vmem %s17_s13, 384  ;;  %p1599_p4 = scmp.lt.s32.totalorder %s17_s13, %s17_s13 }
   0xa   :  { %p1595_p3 = scmp.ne.s32.totalorder %s17_s13, %s1594_s21  ;;  %p1600_p5 = scmp.lt.s32.totalorder %s1594_s21, %s1594_s21 }
   0xc   :  { %p1601_p6 = por %p1600_p5, %p1599_p4 }
   0xe   :  { %p1602_p7 = pnand %p1601_p6, %p1595_p3 }
  0x10   :  { %1605 = shalt.err (!%p1602_p7)
}
  0x11   :  { %s1657_s22 = smov 48   ;;  %s1658_s23 = smov 3  }
  0x12   :  { %22 = dma.hbm_to_vmem [thread:$0]  %s2092_s0, 384, %s17_s13, [#allocation4], %s1657_s22, %s1657_s22, %s1658_s23  }
  0x13   :  { %s1659_s26 = smov [#allocation6]   ;;  %s1606_s30 = scalar_lea.hbm %s2093_s1, 3072 }
  0x14   :  { %s28_s27 = sshll.u32 %s1659_s26, 4  ;;  %p1607_p8 = scmp.ne.s32.totalorder %s2093_s1, %s1606_s30  ;;  %s29_s27 = int_to_ptr.vmem [resolvable:$true] %s28_s27 }
  0x15   :  { %p1610_p9 = scmp.lt.u32.totalorder %s1606_s30, %s2093_s1 }
  0x17   :  { %p1612_p10 = pnand %p1610_p9, %p1607_p8 }
  0x19   :  { %1615 = shalt.err (!%p1612_p10)
}
  0x1a   :  { %s1616_s8 = scalar_lea.vmem %s29_s27, 3072  ;;  %p1621_p12 = scmp.lt.s32.totalorder %s29_s27, %s29_s27 }
  0x1b   :  { %p1617_p11 = scmp.ne.s32.totalorder %s29_s27, %s1616_s8  ;;  %p1622_p13 = scmp.lt.s32.totalorder %s1616_s8, %s1616_s8 }
  0x1d   :  { %p1623_p0 = por %p1622_p13, %p1621_p12 }
  0x1f   :  { %p1624_p1 = pnand %p1623_p0, %p1617_p11 }
  0x21   :  { %1627 = shalt.err (!%p1624_p1)
}
  0x22   :  { %s1660_s0 = smov 192   ;;  %s1661_s9 = smov 12  }
  0x23   :  { %34 = dma.hbm_to_vmem [thread:$0]  %s2093_s1, 3072, %s29_s27, [#allocation7], %s1660_s0, %s1660_s0, %s1661_s9  }
  0x24   :  { %1650 = dma.done.wait [#allocation4], 384  }
  0x25   :  { %1651 = vsyncadd [#allocation4], 4294966912 }
  0x26   :  { %1652 = dma.done.wait [#allocation7], 3072  }
  0x27   :  { %1653 = vsyncadd [#allocation7], 4294964224  ;;  %v1662_v0 = vmov 0.0   ;;  %v1663_v1 = vmov 0   ;;  %vm1664_vm0 = vmmov 0  }
  0x28   :  { %1295 = vmatprep.subr.bf16.mxu1 %v1662_v0  ;;  %48 = vst [vmem:[#allocation2] sm:$0x3] %v1662_v0  ;;  %255 = vmatprep.mubr.bf16.mxu0 %v1663_v1  ;;  %v1715_v2 = vld [vmem:[#allocation6 + $0x4] ss:$12 sps:$4 sm:$0xff]   ;;  %v1717_v3 = vld [vmem:[#allocation6] ss:$12 sps:$4 sm:$0xff]  }
  0x29   :  { %1311 = vmatprep.mubr.msk.bf16.mxu1 %vm1664_vm0, %v1662_v0  ;;  %223 = vmatprep.subr.bf16.mxu0 %v1715_v2  ;;  %v1720_v4 = vld [vmem:[#allocation6 + $0x1c] ss:$12 sps:$4 sm:$0xff]   ;;  %v1723_v5 = vld [vmem:[#allocation6 + $0x18] ss:$12 sps:$4 sm:$0xff]   ;;  %v1726_v6 = vld [vmem:[#allocation6 + $0x34] ss:$12 sps:$4 sm:$0xff]  }
  0x2a   :  { %224 = vmatpush1.bf16.msra.mxu0 %v1717_v3  ;;  %v1729_v7 = vld [vmem:[#allocation6 + $0x30] ss:$12 sps:$4 sm:$0xff]   ;;  %v1732_v8 = vld [vmem:[#allocation6 + $0x4c] ss:$12 sps:$4 sm:$0xff]   ;;  %v1734_v9 = vld [vmem:[#allocation6 + $0x8] ss:$12 sps:$4 sm:$0xff]  }
  0x2b   :  { %225 = vmatprep.subr.bf16.mxu0 %v1720_v4  ;;  %v1737_v10 = vld [vmem:[#allocation6 + $0x48] ss:$12 sps:$4 sm:$0xff]   ;;  %1296 = vmatpush3.bf16.msra.mxu1 %v1734_v9  ;;  %v1741_v11 = vld [vmem:[#allocation6 + $0x64] ss:$12 sps:$4 sm:$0xff]   ;;  %v1744_v12 = vld [vmem:[#allocation6 + $0x20] ss:$12 sps:$4 sm:$0xff]  }
  0x2c   :  { %1297 = vmatprep.subr.bf16.mxu1 %v1662_v0  ;;  %v1746_v13 = vld [vmem:[#allocation6 + $0x60] ss:$12 sps:$4 sm:$0xff]   ;;  %v1750_v14 = vld [vmem:[#allocation6 + $0x38] ss:$12 sps:$4 sm:$0xff]   ;;  %v1753_v15 = vld [vmem:[#allocation6 + $0x7c] ss:$12 sps:$4 sm:$0xff]  }
  0x2d   :  { %v1757_v16 = vld [vmem:[#allocation6 + $0x78] ss:$12 sps:$4 sm:$0xff]   ;;  %v1760_v17 = vld [vmem:[#allocation6 + $0x50] ss:$12 sps:$4 sm:$0xff]   ;;  %v1763_v18 = vld [vmem:[#allocation6 + $0x94] ss:$12 sps:$4 sm:$0xff]  }
  0x2e   :  { %226 = vmatpush1.bf16.msra.mxu0 %v1723_v5  ;;  %v1767_v19 = vld [vmem:[#allocation6 + $0x90] ss:$12 sps:$4 sm:$0xff]   ;;  %v1770_v20 = vld [vmem:[#allocation6 + $0x68] ss:$12 sps:$4 sm:$0xff]   ;;  %v1773_v21 = vld [vmem:[#allocation6 + $0xac] ss:$12 sps:$4 sm:$0xff]  }
  0x2f   :  { %227 = vmatprep.subr.bf16.mxu0 %v1726_v6  ;;  %1298 = vmatpush3.bf16.msra.mxu1 %v1744_v12  ;;  %v1777_v22 = vld [vmem:[#allocation6 + $0xa8] ss:$12 sps:$4 sm:$0xff]   ;;  %v1779_v23 = vld [vmem:[#allocation2] sm:$0x3]  ;;  %v1782_v24 = vld [vmem:[#allocation6 + $0x80] ss:$12 sps:$4 sm:$0xff]  }
  0x30   :  { %1299 = vmatprep.subr.bf16.mxu1 %v1662_v0  ;;  %v94_v25 = vpack.c.bf16 %v1779_v23, %v1779_v23  ;;  %v1790_v26 = vld [vmem:[#allocation6 + $0x98] ss:$12 sps:$4 sm:$0xff]   ;;  %v1795_v27 = vld [vmem:[#allocation6 + $0xb0] ss:$12 sps:$4 sm:$0xff]   ;;  %v93_v28 = vld [vmem:[#allocation3] sm:$0x7] }
  0x31   :  { %v304_v29 = vunpack.c.l.bf16 %v93_v28  ;;  %v313_v33 = vrot.slane %v93_v28, 1  ;;  %v1838_v46 = vld [vmem:[%s2094_s2] ss:$0 sm:$0xff]  ;;  %v325_v47 = vrot.slane %v93_v28, 2  ;;  %v339_v61 = vld [vmem:[#allocation3 + $0x3] sm:$0x7] }
  0x32   :  { %228 = vmatpush1.bf16.msra.mxu0 %v1729_v7  ;;  %v422_v62 = vunpack.c.l.bf16 %v339_v61  ;;  %s1665_s2 = smov [#allocation8]  }
  0x33   :  { %229 = vmatprep.subr.bf16.mxu0 %v1732_v8  ;;  %1300 = vmatpush3.bf16.msra.mxu1 %v1750_v14  ;;  %v315_v37 = vunpack.c.l.bf16 %v313_v33  ;;  %v327_v50 = vunpack.c.l.bf16 %v325_v47  ;;  %s1172_s13 = sshll.u32 %s1665_s2, 4  ;;  %s1173_s13 = int_to_ptr.vmem [resolvable:$true] %s1172_s13 }
  0x34   :  { %1301 = vmatprep.subr.bf16.mxu1 %v1662_v0  ;;  %s1628_s14 = scalar_lea.vmem %s1173_s13, 32  ;;  %p1633_p3 = scmp.lt.s32.totalorder %s1173_s13, %s1173_s13 }
  0x35   :  { %p1629_p2 = scmp.ne.s32.totalorder %s1173_s13, %s1628_s14  ;;  %p1634_p4 = scmp.lt.s32.totalorder %s1628_s14, %s1628_s14 }
  0x36   :  { %230 = vmatpush1.bf16.msra.mxu0 %v1737_v10 }
  0x37   :  { %231 = vmatprep.subr.bf16.mxu0 %v1741_v11  ;;  %1302 = vmatpush3.bf16.msra.mxu1 %v1760_v17  ;;  %p1635_p5 = por %p1634_p4, %p1633_p3 }
  0x38   :  { %1303 = vmatprep.subr.bf16.mxu1 %v1662_v0 }
  0x39   :  { %p1636_p6 = pnand %p1635_p5, %p1629_p2 }
  0x3a   :  { %232 = vmatpush1.bf16.msra.mxu0 %v1746_v13 }
  0x3b   :  { %233 = vmatprep.subr.bf16.mxu0 %v1753_v15  ;;  %1304 = vmatpush3.bf16.msra.mxu1 %v1770_v20 }
  0x3c   :  { %1305 = vmatprep.subr.bf16.mxu1 %v1662_v0 }
  0x3e   :  { %234 = vmatpush1.bf16.msra.mxu0 %v1757_v16 }
  0x3f   :  { %235 = vmatprep.subr.bf16.mxu0 %v1763_v18  ;;  %1306 = vmatpush3.bf16.msra.mxu1 %v1782_v24 }
  0x40   :  { %1307 = vmatprep.subr.bf16.mxu1 %v1662_v0 }
  0x42   :  { %236 = vmatpush1.bf16.msra.mxu0 %v1767_v19 }
  0x43   :  { %237 = vmatprep.subr.bf16.mxu0 %v1773_v21  ;;  %1308 = vmatpush3.bf16.msra.mxu1 %v1790_v26 }
  0x44   :  { %1309 = vmatprep.subr.bf16.mxu1 %v1662_v0 }
  0x46   :  { %238 = vmatpush1.bf16.msra.mxu0 %v1777_v22 }
  0x47   :  { %341 = vmatprep.subr.bf16.mxu0 %v1715_v2  ;;  %1310 = vmatpush3.bf16.msra.mxu1 %v1795_v27 }
  0x48   :  { %1315 = vmatprep.subr.bf16.mxu1 %v1662_v0 }
  0x49   :  { %256 = vmatmul.mubr.bf16.vlgmr.msra.gmra.mrb[0].mxu0 %v94_v25 }
  0x4a   :  { %342 = vmatpush1.bf16.msra.mxu0 %v1717_v3  ;;  %373 = vmatprep.mubr.bf16.mxu0 %v1663_v1 }
  0x4b   :  { %343 = vmatprep.subr.bf16.mxu0 %v1720_v4  ;;  %1312 = vmatmul.mubr.bf16.vlgmr.msra.gmra.mrb[0].mxu1 %v94_v25 }
  0x4c   :  { %1316 = vmatpush3.bf16.msra.mxu1 %v1734_v9  ;;  %1331 = vmatprep.mubr.msk.bf16.mxu1 %vm1664_vm0, %v1662_v0 }
  0x4d   :  { %1317 = vmatprep.subr.bf16.mxu1 %v1662_v0 }
  0x4e   :  { %344 = vmatpush1.bf16.msra.mxu0 %v1723_v5 }
  0x4f   :  { %345 = vmatprep.subr.bf16.mxu0 %v1726_v6 }
  0x50   :  { %1318 = vmatpush3.bf16.msra.mxu1 %v1744_v12 }
  0x51   :  { %1319 = vmatprep.subr.bf16.mxu1 %v1662_v0 }
  0x52   :  { %346 = vmatpush1.bf16.msra.mxu0 %v1729_v7 }
  0x53   :  { %347 = vmatprep.subr.bf16.mxu0 %v1732_v8 }
  0x54   :  { %1320 = vmatpush3.bf16.msra.mxu1 %v1750_v14 }
  0x55   :  { %1321 = vmatprep.subr.bf16.mxu1 %v1662_v0 }
  0x56   :  { %348 = vmatpush1.bf16.msra.mxu0 %v1737_v10 }
  0x57   :  { %349 = vmatprep.subr.bf16.mxu0 %v1741_v11 }
  0x58   :  { %1322 = vmatpush3.bf16.msra.mxu1 %v1760_v17 }
  0x59   :  { %1323 = vmatprep.subr.bf16.mxu1 %v1662_v0 }
  0x5a   :  { %350 = vmatpush1.bf16.msra.mxu0 %v1746_v13 }
  0x5b   :  { %351 = vmatprep.subr.bf16.mxu0 %v1753_v15 }
  0x5c   :  { %1324 = vmatpush3.bf16.msra.mxu1 %v1770_v20 }
  0x5d   :  { %1325 = vmatprep.subr.bf16.mxu1 %v1662_v0 }
  0x5e   :  { %352 = vmatpush1.bf16.msra.mxu0 %v1757_v16 }
  0x5f   :  { %353 = vmatprep.subr.bf16.mxu0 %v1763_v18 }
  0x60   :  { %1326 = vmatpush3.bf16.msra.mxu1 %v1782_v24 }
  0x61   :  { %1327 = vmatprep.subr.bf16.mxu1 %v1662_v0 }
  0x62   :  { %354 = vmatpush1.bf16.msra.mxu0 %v1767_v19 }
  0x63   :  { %355 = vmatprep.subr.bf16.mxu0 %v1773_v21 }
  0x64   :  { %1328 = vmatpush3.bf16.msra.mxu1 %v1790_v26 }
  0x65   :  { %1329 = vmatprep.subr.bf16.mxu1 %v1662_v0 }
  0x66   :  { %356 = vmatpush1.bf16.msra.mxu0 %v1777_v22 }
  0x67   :  { %459 = vmatprep.subr.bf16.mxu0 %v1715_v2 }
  0x68   :  { %1330 = vmatpush3.bf16.msra.mxu1 %v1795_v27 }
  0x69   :  { %1335 = vmatprep.subr.bf16.mxu1 %v1662_v0 }
 0x11c   :  { %v257_v30 = vpop.f32.mrb[0].mxu0 }
 0x11d   :  { %v305_v31 = vadd.f32 %v304_v29, %v257_v30  ;;  %v259_v32 = vpop.f32.mrb[1].mxu0  ;;  %v431_v29 = vrot.slane %v339_v61, 1 }
 0x11e   :  { %v261_v34 = vpop.f32.mrb[2].mxu0  ;;  %v298_v38 = vpop.f32.mrb[0].mxu1  ;;  %v316_v39 = vadd.f32 %v315_v37, %v259_v32 }
 0x11f   :  { %v1207_v35 = vmul.f32 -1.442695, %v305_v31  ;;  %v262_v36 = vpop.f32.mrb[3].mxu0  ;;  %v1313_v40 = vpop.f32.mrb[1].mxu1  ;;  %v323_v48 = vadd.f32 %v1838_v46, %v298_v38 }
 0x120   :  { %v301_v41 = vpop.f32.mrb[2].mxu1  ;;  %v1208_v43 = vmul.f32 -1.442695, %v316_v39  ;;  %v433_v36 = vunpack.c.l.bf16 %v431_v29 }
 0x121   :  { %1497 = vpow2.f32 %v1207_v35  ;;  %v1314_v42 = vpop.f32.mrb[3].mxu1  ;;  %v443_v41 = vrot.slane %v339_v61, 2 }
 0x122   :  { %1499 = vpow2.f32 %v1208_v43 }
 0x12b   :  { %v1498_v44 = vpop.eup %1497 }
 0x12c   :  { %v309_v45 = vadd.f32 1.0, %v1498_v44  ;;  %v1500_v49 = vpop.eup %1499  ;;  %v445_v44 = vunpack.c.l.bf16 %v443_v41 }
 0x12d   :  { %v320_v53 = vadd.f32 1.0, %v1500_v49 }
 0x12e   :  { %1501 = vrcp.f32 %v309_v45 }
 0x138   :  { %v1502_v51 = vpop.eup %1501 }
 0x139   :  { %v324_v52 = vmul.f32 %v1502_v51, %v323_v48 }
 0x13b   :  { %v328_v54 = vadd.f32 %v327_v50, %v324_v52 }
 0x13d   :  { %1503 = vtanh.f32 %v328_v54 }
 0x13e   :  { %1505 = vrcp.f32 %v320_v53 }
 0x147   :  { %v1504_v55 = vpop.eup %1503 }
 0x148   :  { %v330_v56 = vsub.f32 %v1779_v23, %v1504_v55  ;;  %v1506_v57 = vpop.eup %1505 }
 0x14a   :  { %v331_v58 = vmul.f32 %v1506_v57, %v330_v56  ;;  %v457_v56 = vld [vmem:[#allocation3 + $0x6] sm:$0x7] }
 0x14b   :  { %v540_v57 = vunpack.c.l.bf16 %v457_v56 }
 0x14c   :  { %v1842_v59 = vadd.f32 %v1504_v55, %v331_v58 }
 0x14e   :  { %v340_v60 = vpack.c.bf16 %v1842_v59, %v1842_v59 }
 0x150   :  { %374 = vmatmul.mubr.bf16.vlgmr.msra.gmra.mrb[4].mxu0 %v340_v60  ;;  %1332 = vmatmul.mubr.bf16.vlgmr.msra.gmra.mrb[4].mxu1 %v340_v60 }
 0x151   :  { %460 = vmatpush1.bf16.msra.mxu0 %v1717_v3  ;;  %1336 = vmatpush3.bf16.msra.mxu1 %v1734_v9 }
 0x152   :  { %461 = vmatprep.subr.bf16.mxu0 %v1720_v4  ;;  %1337 = vmatprep.subr.bf16.mxu1 %v1662_v0 }
 0x153   :  { %491 = vmatprep.mubr.bf16.mxu0 %v1663_v1  ;;  %1351 = vmatprep.mubr.msk.bf16.mxu1 %vm1664_vm0, %v1662_v0 }
 0x155   :  { %462 = vmatpush1.bf16.msra.mxu0 %v1723_v5  ;;  %1338 = vmatpush3.bf16.msra.mxu1 %v1744_v12 }
 0x156   :  { %463 = vmatprep.subr.bf16.mxu0 %v1726_v6  ;;  %1339 = vmatprep.subr.bf16.mxu1 %v1662_v0 }
 0x159   :  { %464 = vmatpush1.bf16.msra.mxu0 %v1729_v7  ;;  %1340 = vmatpush3.bf16.msra.mxu1 %v1750_v14 }
 0x15a   :  { %465 = vmatprep.subr.bf16.mxu0 %v1732_v8  ;;  %1341 = vmatprep.subr.bf16.mxu1 %v1662_v0 }
 0x15d   :  { %466 = vmatpush1.bf16.msra.mxu0 %v1737_v10  ;;  %1342 = vmatpush3.bf16.msra.mxu1 %v1760_v17 }
 0x15e   :  { %467 = vmatprep.subr.bf16.mxu0 %v1741_v11  ;;  %1343 = vmatprep.subr.bf16.mxu1 %v1662_v0 }
 0x161   :  { %468 = vmatpush1.bf16.msra.mxu0 %v1746_v13  ;;  %1344 = vmatpush3.bf16.msra.mxu1 %v1770_v20 }
 0x162   :  { %469 = vmatprep.subr.bf16.mxu0 %v1753_v15  ;;  %1345 = vmatprep.subr.bf16.mxu1 %v1662_v0 }
 0x165   :  { %470 = vmatpush1.bf16.msra.mxu0 %v1757_v16  ;;  %1346 = vmatpush3.bf16.msra.mxu1 %v1782_v24 }
 0x166   :  { %471 = vmatprep.subr.bf16.mxu0 %v1763_v18  ;;  %1347 = vmatprep.subr.bf16.mxu1 %v1662_v0 }
 0x169   :  { %472 = vmatpush1.bf16.msra.mxu0 %v1767_v19  ;;  %1348 = vmatpush3.bf16.msra.mxu1 %v1790_v26 }
 0x16a   :  { %473 = vmatprep.subr.bf16.mxu0 %v1773_v21  ;;  %1349 = vmatprep.subr.bf16.mxu1 %v1662_v0 }
 0x16d   :  { %474 = vmatpush1.bf16.msra.mxu0 %v1777_v22  ;;  %1350 = vmatpush3.bf16.msra.mxu1 %v1795_v27 }
 0x16e   :  { %577 = vmatprep.subr.bf16.mxu0 %v1715_v2  ;;  %1355 = vmatprep.subr.bf16.mxu1 %v1662_v0 }
 0x223   :  { %v375_v63 = vpop.f32.mrb[4].mxu0  ;;  %v416_v23 = vpop.f32.mrb[4].mxu1 }
 0x224   :  { %v423_v25 = vadd.f32 %v422_v62, %v375_v63  ;;  %v377_v28 = vpop.f32.mrb[5].mxu0  ;;  %v1333_v30 = vpop.f32.mrb[5].mxu1  ;;  %v441_v43 = vadd.f32 %v1838_v46, %v416_v23  ;;  %v549_v62 = vrot.slane %v457_v56, 1 }
 0x225   :  { %v379_v31 = vpop.f32.mrb[6].mxu0  ;;  %v419_v32 = vpop.f32.mrb[6].mxu1  ;;  %v434_v37 = vadd.f32 %v433_v36, %v377_v28  ;;  %v561_v36 = vrot.slane %v457_v56, 2 }
 0x226   :  { %v1209_v33 = vmul.f32 -1.442695, %v423_v25  ;;  %v380_v34 = vpop.f32.mrb[7].mxu0  ;;  %v1334_v35 = vpop.f32.mrb[7].mxu1  ;;  %v551_v31 = vunpack.c.l.bf16 %v549_v62 }
 0x227   :  { %v1210_v38 = vmul.f32 -1.442695, %v434_v37 }
 0x228   :  { %1507 = vpow2.f32 %v1209_v33 }
 0x229   :  { %1509 = vpow2.f32 %v1210_v38 }
 0x232   :  { %v1508_v39 = vpop.eup %1507 }
 0x233   :  { %v427_v40 = vadd.f32 1.0, %v1508_v39  ;;  %v1510_v42 = vpop.eup %1509  ;;  %v563_v39 = vunpack.c.l.bf16 %v561_v36 }
 0x234   :  { %v438_v49 = vadd.f32 1.0, %v1510_v42 }
 0x235   :  { %1511 = vrcp.f32 %v427_v40 }
 0x23f   :  { %v1512_v45 = vpop.eup %1511 }
 0x240   :  { %v442_v47 = vmul.f32 %v1512_v45, %v441_v43 }
 0x242   :  { %v446_v48 = vadd.f32 %v445_v44, %v442_v47 }
 0x244   :  { %1513 = vtanh.f32 %v446_v48 }
 0x245   :  { %1515 = vrcp.f32 %v438_v49 }
 0x24e   :  { %v1514_v50 = vpop.eup %1513 }
 0x24f   :  { %v448_v51 = vsub.f32 %v1842_v59, %v1514_v50  ;;  %v1516_v52 = vpop.eup %1515 }
 0x251   :  { %v449_v53 = vmul.f32 %v1516_v52, %v448_v51  ;;  %v575_v51 = vld [vmem:[#allocation3 + $0x9] sm:$0x7] }
 0x252   :  { %v658_v52 = vunpack.c.l.bf16 %v575_v51 }
 0x253   :  { %v1883_v54 = vadd.f32 %v1514_v50, %v449_v53 }
 0x255   :  { %v458_v55 = vpack.c.bf16 %v1883_v54, %v1883_v54 }
 0x257   :  { %492 = vmatmul.mubr.bf16.vlgmr.msra.gmra.mrb[8].mxu0 %v458_v55  ;;  %1352 = vmatmul.mubr.bf16.vlgmr.msra.gmra.mrb[8].mxu1 %v458_v55 }
 0x258   :  { %578 = vmatpush1.bf16.msra.mxu0 %v1717_v3  ;;  %1356 = vmatpush3.bf16.msra.mxu1 %v1734_v9 }
 0x259   :  { %579 = vmatprep.subr.bf16.mxu0 %v1720_v4  ;;  %1357 = vmatprep.subr.bf16.mxu1 %v1662_v0 }
 0x25a   :  { %609 = vmatprep.mubr.bf16.mxu0 %v1663_v1  ;;  %1371 = vmatprep.mubr.msk.bf16.mxu1 %vm1664_vm0, %v1662_v0 }
 0x25c   :  { %580 = vmatpush1.bf16.msra.mxu0 %v1723_v5  ;;  %1358 = vmatpush3.bf16.msra.mxu1 %v1744_v12 }
 0x25d   :  { %581 = vmatprep.subr.bf16.mxu0 %v1726_v6  ;;  %1359 = vmatprep.subr.bf16.mxu1 %v1662_v0 }
 0x260   :  { %582 = vmatpush1.bf16.msra.mxu0 %v1729_v7  ;;  %1360 = vmatpush3.bf16.msra.mxu1 %v1750_v14 }
 0x261   :  { %583 = vmatprep.subr.bf16.mxu0 %v1732_v8  ;;  %1361 = vmatprep.subr.bf16.mxu1 %v1662_v0 }
 0x264   :  { %584 = vmatpush1.bf16.msra.mxu0 %v1737_v10  ;;  %1362 = vmatpush3.bf16.msra.mxu1 %v1760_v17 }
 0x265   :  { %585 = vmatprep.subr.bf16.mxu0 %v1741_v11  ;;  %1363 = vmatprep.subr.bf16.mxu1 %v1662_v0 }
 0x268   :  { %586 = vmatpush1.bf16.msra.mxu0 %v1746_v13  ;;  %1364 = vmatpush3.bf16.msra.mxu1 %v1770_v20 }
 0x269   :  { %587 = vmatprep.subr.bf16.mxu0 %v1753_v15  ;;  %1365 = vmatprep.subr.bf16.mxu1 %v1662_v0 }
 0x26c   :  { %588 = vmatpush1.bf16.msra.mxu0 %v1757_v16  ;;  %1366 = vmatpush3.bf16.msra.mxu1 %v1782_v24 }
 0x26d   :  { %589 = vmatprep.subr.bf16.mxu0 %v1763_v18  ;;  %1367 = vmatprep.subr.bf16.mxu1 %v1662_v0 }
 0x270   :  { %590 = vmatpush1.bf16.msra.mxu0 %v1767_v19  ;;  %1368 = vmatpush3.bf16.msra.mxu1 %v1790_v26 }
 0x271   :  { %591 = vmatprep.subr.bf16.mxu0 %v1773_v21  ;;  %1369 = vmatprep.subr.bf16.mxu1 %v1662_v0 }
 0x274   :  { %592 = vmatpush1.bf16.msra.mxu0 %v1777_v22  ;;  %1370 = vmatpush3.bf16.msra.mxu1 %v1795_v27 }
 0x275   :  { %695 = vmatprep.subr.bf16.mxu0 %v1715_v2  ;;  %1375 = vmatprep.subr.bf16.mxu1 %v1662_v0 }
 0x32a   :  { %v493_v58 = vpop.f32.mrb[8].mxu0  ;;  %v534_v59 = vpop.f32.mrb[8].mxu1 }
 0x32b   :  { %v541_v60 = vadd.f32 %v540_v57, %v493_v58  ;;  %v495_v61 = vpop.f32.mrb[9].mxu0  ;;  %v1353_v63 = vpop.f32.mrb[9].mxu1  ;;  %v559_v38 = vadd.f32 %v1838_v46, %v534_v59  ;;  %v667_v57 = vrot.slane %v575_v51, 1 }
 0x32c   :  { %v497_v23 = vpop.f32.mrb[10].mxu0  ;;  %v537_v25 = vpop.f32.mrb[10].mxu1  ;;  %v552_v32 = vadd.f32 %v551_v31, %v495_v61  ;;  %v679_v31 = vrot.slane %v575_v51, 2 }
 0x32d   :  { %v1211_v28 = vmul.f32 -1.442695, %v541_v60  ;;  %v498_v29 = vpop.f32.mrb[11].mxu0  ;;  %v1354_v30 = vpop.f32.mrb[11].mxu1  ;;  %v669_v23 = vunpack.c.l.bf16 %v667_v57 }
 0x32e   :  { %v1212_v33 = vmul.f32 -1.442695, %v552_v32 }
 0x32f   :  { %1517 = vpow2.f32 %v1211_v28 }
 0x330   :  { %1519 = vpow2.f32 %v1212_v33 }
 0x339   :  { %v1518_v34 = vpop.eup %1517 }
 0x33a   :  { %v545_v35 = vadd.f32 1.0, %v1518_v34  ;;  %v1520_v37 = vpop.eup %1519  ;;  %v681_v34 = vunpack.c.l.bf16 %v679_v31 }
 0x33b   :  { %v556_v43 = vadd.f32 1.0, %v1520_v37 }
 0x33c   :  { %1521 = vrcp.f32 %v545_v35 }
 0x346   :  { %v1522_v40 = vpop.eup %1521 }
 0x347   :  { %v560_v41 = vmul.f32 %v1522_v40, %v559_v38 }
 0x349   :  { %v564_v42 = vadd.f32 %v563_v39, %v560_v41 }
 0x34b   :  { %1523 = vtanh.f32 %v564_v42 }
 0x34c   :  { %1525 = vrcp.f32 %v556_v43 }
 0x355   :  { %v1524_v44 = vpop.eup %1523 }
 0x356   :  { %v566_v45 = vsub.f32 %v1883_v54, %v1524_v44  ;;  %v1526_v47 = vpop.eup %1525 }
 0x358   :  { %v567_v48 = vmul.f32 %v1526_v47, %v566_v45  ;;  %v693_v45 = vld [vmem:[#allocation3 + $0xc] sm:$0x7] }
 0x359   :  { %v776_v47 = vunpack.c.l.bf16 %v693_v45 }
 0x35a   :  { %v1924_v49 = vadd.f32 %v1524_v44, %v567_v48 }
 0x35c   :  { %v576_v50 = vpack.c.bf16 %v1924_v49, %v1924_v49 }
 0x35e   :  { %610 = vmatmul.mubr.bf16.vlgmr.msra.gmra.mrb[12].mxu0 %v576_v50  ;;  %1372 = vmatmul.mubr.bf16.vlgmr.msra.gmra.mrb[12].mxu1 %v576_v50 }
 0x35f   :  { %696 = vmatpush1.bf16.msra.mxu0 %v1717_v3  ;;  %1376 = vmatpush3.bf16.msra.mxu1 %v1734_v9 }
 0x360   :  { %697 = vmatprep.subr.bf16.mxu0 %v1720_v4  ;;  %1377 = vmatprep.subr.bf16.mxu1 %v1662_v0 }
 0x361   :  { %727 = vmatprep.mubr.bf16.mxu0 %v1663_v1  ;;  %1391 = vmatprep.mubr.msk.bf16.mxu1 %vm1664_vm0, %v1662_v0 }
 0x363   :  { %698 = vmatpush1.bf16.msra.mxu0 %v1723_v5  ;;  %1378 = vmatpush3.bf16.msra.mxu1 %v1744_v12 }
 0x364   :  { %699 = vmatprep.subr.bf16.mxu0 %v1726_v6  ;;  %1379 = vmatprep.subr.bf16.mxu1 %v1662_v0 }
 0x367   :  { %700 = vmatpush1.bf16.msra.mxu0 %v1729_v7  ;;  %1380 = vmatpush3.bf16.msra.mxu1 %v1750_v14 }
 0x368   :  { %701 = vmatprep.subr.bf16.mxu0 %v1732_v8  ;;  %1381 = vmatprep.subr.bf16.mxu1 %v1662_v0 }
 0x36b   :  { %702 = vmatpush1.bf16.msra.mxu0 %v1737_v10  ;;  %1382 = vmatpush3.bf16.msra.mxu1 %v1760_v17 }
 0x36c   :  { %703 = vmatprep.subr.bf16.mxu0 %v1741_v11  ;;  %1383 = vmatprep.subr.bf16.mxu1 %v1662_v0 }
 0x36f   :  { %704 = vmatpush1.bf16.msra.mxu0 %v1746_v13  ;;  %1384 = vmatpush3.bf16.msra.mxu1 %v1770_v20 }
 0x370   :  { %705 = vmatprep.subr.bf16.mxu0 %v1753_v15  ;;  %1385 = vmatprep.subr.bf16.mxu1 %v1662_v0 }
 0x373   :  { %706 = vmatpush1.bf16.msra.mxu0 %v1757_v16  ;;  %1386 = vmatpush3.bf16.msra.mxu1 %v1782_v24 }
 0x374   :  { %707 = vmatprep.subr.bf16.mxu0 %v1763_v18  ;;  %1387 = vmatprep.subr.bf16.mxu1 %v1662_v0 }
 0x377   :  { %708 = vmatpush1.bf16.msra.mxu0 %v1767_v19  ;;  %1388 = vmatpush3.bf16.msra.mxu1 %v1790_v26 }
 0x378   :  { %709 = vmatprep.subr.bf16.mxu0 %v1773_v21  ;;  %1389 = vmatprep.subr.bf16.mxu1 %v1662_v0 }
 0x37b   :  { %710 = vmatpush1.bf16.msra.mxu0 %v1777_v22  ;;  %1390 = vmatpush3.bf16.msra.mxu1 %v1795_v27 }
 0x37c   :  { %813 = vmatprep.subr.bf16.mxu0 %v1715_v2  ;;  %1395 = vmatprep.subr.bf16.mxu1 %v1662_v0 }
 0x431   :  { %v611_v53 = vpop.f32.mrb[12].mxu0  ;;  %v652_v54 = vpop.f32.mrb[12].mxu1 }
 0x432   :  { %v659_v55 = vadd.f32 %v658_v52, %v611_v53  ;;  %v613_v56 = vpop.f32.mrb[13].mxu0  ;;  %v1373_v58 = vpop.f32.mrb[13].mxu1  ;;  %v677_v33 = vadd.f32 %v1838_v46, %v652_v54  ;;  %v785_v52 = vrot.slane %v693_v45, 1 }
 0x433   :  { %v615_v59 = vpop.f32.mrb[14].mxu0  ;;  %v655_v60 = vpop.f32.mrb[14].mxu1  ;;  %v670_v25 = vadd.f32 %v669_v23, %v613_v56  ;;  %v797_v23 = vrot.slane %v693_v45, 2 }
 0x434   :  { %v1213_v61 = vmul.f32 -1.442695, %v659_v55  ;;  %v616_v62 = vpop.f32.mrb[15].mxu0  ;;  %v1374_v63 = vpop.f32.mrb[15].mxu1  ;;  %v787_v59 = vunpack.c.l.bf16 %v785_v52 }
 0x435   :  { %v1214_v28 = vmul.f32 -1.442695, %v670_v25 }
 0x436   :  { %1527 = vpow2.f32 %v1213_v61 }
 0x437   :  { %1529 = vpow2.f32 %v1214_v28 }
 0x440   :  { %v1528_v29 = vpop.eup %1527 }
 0x441   :  { %v663_v30 = vadd.f32 1.0, %v1528_v29  ;;  %v1530_v32 = vpop.eup %1529  ;;  %v799_v29 = vunpack.c.l.bf16 %v797_v23 }
 0x442   :  { %v674_v38 = vadd.f32 1.0, %v1530_v32 }
 0x443   :  { %1531 = vrcp.f32 %v663_v30 }
 0x44d   :  { %v1532_v35 = vpop.eup %1531 }
 0x44e   :  { %v678_v36 = vmul.f32 %v1532_v35, %v677_v33 }
 0x450   :  { %v682_v37 = vadd.f32 %v681_v34, %v678_v36 }
 0x452   :  { %1533 = vtanh.f32 %v682_v37 }
 0x453   :  { %1535 = vrcp.f32 %v674_v38 }
 0x45c   :  { %v1534_v39 = vpop.eup %1533 }
 0x45d   :  { %v684_v40 = vsub.f32 %v1924_v49, %v1534_v39  ;;  %v1536_v41 = vpop.eup %1535 }
 0x45f   :  { %v685_v42 = vmul.f32 %v1536_v41, %v684_v40 }
 0x461   :  { %v1965_v43 = vadd.f32 %v1534_v39, %v685_v42 }
 0x463   :  { %v694_v44 = vpack.c.bf16 %v1965_v43, %v1965_v43 }
 0x465   :  { %728 = vmatmul.mubr.bf16.vlgmr.msra.gmra.mrb[16].mxu0 %v694_v44  ;;  %1392 = vmatmul.mubr.bf16.vlgmr.msra.gmra.mrb[16].mxu1 %v694_v44 }
 0x466   :  { %814 = vmatpush1.bf16.msra.mxu0 %v1717_v3  ;;  %1396 = vmatpush3.bf16.msra.mxu1 %v1734_v9 }
 0x467   :  { %815 = vmatprep.subr.bf16.mxu0 %v1720_v4  ;;  %1397 = vmatprep.subr.bf16.mxu1 %v1662_v0 }
 0x468   :  { %845 = vmatprep.mubr.bf16.mxu0 %v1663_v1  ;;  %1411 = vmatprep.mubr.msk.bf16.mxu1 %vm1664_vm0, %v1662_v0 }
 0x46a   :  { %816 = vmatpush1.bf16.msra.mxu0 %v1723_v5  ;;  %1398 = vmatpush3.bf16.msra.mxu1 %v1744_v12 }
 0x46b   :  { %817 = vmatprep.subr.bf16.mxu0 %v1726_v6  ;;  %1399 = vmatprep.subr.bf16.mxu1 %v1662_v0 }
 0x46e   :  { %818 = vmatpush1.bf16.msra.mxu0 %v1729_v7  ;;  %1400 = vmatpush3.bf16.msra.mxu1 %v1750_v14 }
 0x46f   :  { %819 = vmatprep.subr.bf16.mxu0 %v1732_v8  ;;  %1401 = vmatprep.subr.bf16.mxu1 %v1662_v0 }
 0x472   :  { %820 = vmatpush1.bf16.msra.mxu0 %v1737_v10  ;;  %1402 = vmatpush3.bf16.msra.mxu1 %v1760_v17 }
 0x473   :  { %821 = vmatprep.subr.bf16.mxu0 %v1741_v11  ;;  %1403 = vmatprep.subr.bf16.mxu1 %v1662_v0 }
 0x476   :  { %822 = vmatpush1.bf16.msra.mxu0 %v1746_v13  ;;  %1404 = vmatpush3.bf16.msra.mxu1 %v1770_v20 }
 0x477   :  { %823 = vmatprep.subr.bf16.mxu0 %v1753_v15  ;;  %1405 = vmatprep.subr.bf16.mxu1 %v1662_v0 }
 0x47a   :  { %824 = vmatpush1.bf16.msra.mxu0 %v1757_v16  ;;  %1406 = vmatpush3.bf16.msra.mxu1 %v1782_v24 }
 0x47b   :  { %825 = vmatprep.subr.bf16.mxu0 %v1763_v18  ;;  %1407 = vmatprep.subr.bf16.mxu1 %v1662_v0 }
 0x47e   :  { %826 = vmatpush1.bf16.msra.mxu0 %v1767_v19  ;;  %1408 = vmatpush3.bf16.msra.mxu1 %v1790_v26 }
 0x47f   :  { %827 = vmatprep.subr.bf16.mxu0 %v1773_v21  ;;  %1409 = vmatprep.subr.bf16.mxu1 %v1662_v0 }
 0x482   :  { %828 = vmatpush1.bf16.msra.mxu0 %v1777_v22  ;;  %1410 = vmatpush3.bf16.msra.mxu1 %v1795_v27 }
 0x483   :  { %931 = vmatprep.subr.bf16.mxu0 %v1715_v2  ;;  %1415 = vmatprep.subr.bf16.mxu1 %v1662_v0 }
 0x538   :  { %v729_v48 = vpop.f32.mrb[16].mxu0  ;;  %v770_v49 = vpop.f32.mrb[16].mxu1 }
 0x539   :  { %v777_v50 = vadd.f32 %v776_v47, %v729_v48  ;;  %v731_v51 = vpop.f32.mrb[17].mxu0  ;;  %v1393_v53 = vpop.f32.mrb[17].mxu1  ;;  %v795_v28 = vadd.f32 %v1838_v46, %v770_v49 }
 0x53a   :  { %v733_v54 = vpop.f32.mrb[18].mxu0  ;;  %v773_v55 = vpop.f32.mrb[18].mxu1  ;;  %v788_v60 = vadd.f32 %v787_v59, %v731_v51 }
 0x53b   :  { %v1215_v56 = vmul.f32 -1.442695, %v777_v50  ;;  %v734_v57 = vpop.f32.mrb[19].mxu0  ;;  %v1394_v58 = vpop.f32.mrb[19].mxu1 }
 0x53c   :  { %v1216_v61 = vmul.f32 -1.442695, %v788_v60 }
 0x53d   :  { %1537 = vpow2.f32 %v1215_v56 }
 0x53e   :  { %1539 = vpow2.f32 %v1216_v61 }
 0x547   :  { %v1538_v62 = vpop.eup %1537 }
 0x548   :  { %v781_v63 = vadd.f32 1.0, %v1538_v62  ;;  %v1540_v25 = vpop.eup %1539 }
 0x549   :  { %v792_v33 = vadd.f32 1.0, %v1540_v25  ;;  %v1577_v25 = vld [vmem:[#allocation6] ss:$12 sps:$4 sm:$0xff]  }
 0x54a   :  { %1541 = vrcp.f32 %v781_v63 }
 0x554   :  { %v1542_v30 = vpop.eup %1541 }
 0x555   :  { %v796_v31 = vmul.f32 %v1542_v30, %v795_v28  ;;  %v1578_v28 = vld [vmem:[#allocation6 + $0x1c] ss:$12 sps:$4 sm:$0xff]   ;;  %v1580_v30 = vld [vmem:[#allocation6 + $0x34] ss:$12 sps:$4 sm:$0xff]  }
 0x557   :  { %v800_v32 = vadd.f32 %v799_v29, %v796_v31  ;;  %v1579_v29 = vld [vmem:[#allocation6 + $0x18] ss:$12 sps:$4 sm:$0xff]   ;;  %v1581_v31 = vld [vmem:[#allocation6 + $0x30] ss:$12 sps:$4 sm:$0xff]  }
 0x559   :  { %1543 = vtanh.f32 %v800_v32 }
 0x55a   :  { %1545 = vrcp.f32 %v792_v33 }
 0x563   :  { %v1544_v34 = vpop.eup %1543 }
 0x564   :  { %v802_v35 = vsub.f32 %v1965_v43, %v1544_v34  ;;  %v1546_v36 = vpop.eup %1545 }
 0x566   :  { %v803_v37 = vmul.f32 %v1546_v36, %v802_v35 }
 0x568   :  { %v2006_v38 = vadd.f32 %v1544_v34, %v803_v37 }
 0x56a   :  { %v812_v39 = vpack.c.bf16 %v2006_v38, %v2006_v38 }
 0x56c   :  { %846 = vmatmul.mubr.bf16.vlgmr.msra.gmra.mrb[20].mxu0 %v812_v39  ;;  %1412 = vmatmul.mubr.bf16.vlgmr.msra.gmra.mrb[20].mxu1 %v812_v39 }
 0x56d   :  { %932 = vmatpush1.bf16.msra.mxu0 %v1717_v3  ;;  %1416 = vmatpush3.bf16.msra.mxu1 %v1734_v9  ;;  %v811_v3 = vld [vmem:[#allocation3 + $0xf] sm:$0x7] }
 0x56e   :  { %933 = vmatprep.subr.bf16.mxu0 %v1720_v4  ;;  %1417 = vmatprep.subr.bf16.mxu1 %v1662_v0  ;;  %v894_v4 = vunpack.c.l.bf16 %v811_v3  ;;  %v915_v51 = vrot.slane %v811_v3, 2 }
 0x56f   :  { %963 = vmatprep.mubr.bf16.mxu0 %v1663_v1  ;;  %1431 = vmatprep.mubr.msk.bf16.mxu1 %vm1664_vm0, %v1662_v0 }
 0x570   :  { %v917_v54 = vunpack.c.l.bf16 %v915_v51 }
 0x571   :  { %934 = vmatpush1.bf16.msra.mxu0 %v1723_v5  ;;  %1418 = vmatpush3.bf16.msra.mxu1 %v1744_v12 }
 0x572   :  { %935 = vmatprep.subr.bf16.mxu0 %v1726_v6  ;;  %1419 = vmatprep.subr.bf16.mxu1 %v1662_v0 }
 0x575   :  { %936 = vmatpush1.bf16.msra.mxu0 %v1729_v7  ;;  %1420 = vmatpush3.bf16.msra.mxu1 %v1750_v14 }
 0x576   :  { %937 = vmatprep.subr.bf16.mxu0 %v1732_v8  ;;  %1421 = vmatprep.subr.bf16.mxu1 %v1662_v0 }
 0x579   :  { %938 = vmatpush1.bf16.msra.mxu0 %v1737_v10  ;;  %1422 = vmatpush3.bf16.msra.mxu1 %v1760_v17  ;;  %v903_v10 = vrot.slane %v811_v3, 1 }
 0x57a   :  { %939 = vmatprep.subr.bf16.mxu0 %v1741_v11  ;;  %1423 = vmatprep.subr.bf16.mxu1 %v1662_v0 }
 0x57b   :  { %v905_v47 = vunpack.c.l.bf16 %v903_v10 }
 0x57d   :  { %940 = vmatpush1.bf16.msra.mxu0 %v1746_v13  ;;  %1424 = vmatpush3.bf16.msra.mxu1 %v1770_v20 }
 0x57e   :  { %941 = vmatprep.subr.bf16.mxu0 %v1753_v15  ;;  %1425 = vmatprep.subr.bf16.mxu1 %v1662_v0 }
 0x581   :  { %942 = vmatpush1.bf16.msra.mxu0 %v1757_v16  ;;  %1426 = vmatpush3.bf16.msra.mxu1 %v1782_v24 }
 0x582   :  { %943 = vmatprep.subr.bf16.mxu0 %v1763_v18  ;;  %1427 = vmatprep.subr.bf16.mxu1 %v1662_v0 }
 0x585   :  { %944 = vmatpush1.bf16.msra.mxu0 %v1767_v19  ;;  %1428 = vmatpush3.bf16.msra.mxu1 %v1790_v26 }
 0x586   :  { %945 = vmatprep.subr.bf16.mxu0 %v1773_v21  ;;  %1429 = vmatprep.subr.bf16.mxu1 %v1662_v0 }
 0x589   :  { %946 = vmatpush1.bf16.msra.mxu0 %v1777_v22  ;;  %1430 = vmatpush3.bf16.msra.mxu1 %v1795_v27 }
 0x58a   :  { %1049 = vmatprep.subr.bf16.mxu0 %v1715_v2  ;;  %1435 = vmatprep.subr.bf16.mxu1 %v1662_v0 }
 0x63f   :  { %v847_v5 = vpop.f32.mrb[20].mxu0  ;;  %v888_v6 = vpop.f32.mrb[20].mxu1 }
 0x640   :  { %v895_v7 = vadd.f32 %v894_v4, %v847_v5  ;;  %v849_v8 = vpop.f32.mrb[21].mxu0  ;;  %v1413_v40 = vpop.f32.mrb[21].mxu1  ;;  %v913_v53 = vadd.f32 %v1838_v46, %v888_v6 }
 0x641   :  { %v851_v41 = vpop.f32.mrb[22].mxu0  ;;  %v891_v42 = vpop.f32.mrb[22].mxu1  ;;  %v906_v48 = vadd.f32 %v905_v47, %v849_v8 }
 0x642   :  { %v1217_v43 = vmul.f32 -1.442695, %v895_v7  ;;  %v852_v44 = vpop.f32.mrb[23].mxu0  ;;  %v1414_v45 = vpop.f32.mrb[23].mxu1  ;;  %v1047_v41 = vld [vmem:[#allocation3 + $0x15] sm:$0x7] }
 0x643   :  { %v1218_v49 = vmul.f32 -1.442695, %v906_v48  ;;  %v1130_v42 = vunpack.c.l.bf16 %v1047_v41  ;;  %v1139_v48 = vrot.slane %v1047_v41, 1 }
 0x644   :  { %1547 = vpow2.f32 %v1217_v43 }
 0x645   :  { %1549 = vpow2.f32 %v1218_v49 }
 0x64e   :  { %v1548_v2 = vpop.eup %1547 }
 0x64f   :  { %v899_v50 = vadd.f32 1.0, %v1548_v2  ;;  %v1550_v52 = vpop.eup %1549 }
 0x650   :  { %v910_v58 = vadd.f32 1.0, %v1550_v52 }
 0x651   :  { %1551 = vrcp.f32 %v899_v50 }
 0x65b   :  { %v1552_v55 = vpop.eup %1551 }
 0x65c   :  { %v914_v56 = vmul.f32 %v1552_v55, %v913_v53 }
 0x65e   :  { %v918_v57 = vadd.f32 %v917_v54, %v914_v56  ;;  %v1141_v54 = vunpack.c.l.bf16 %v1139_v48 }
 0x660   :  { %1553 = vtanh.f32 %v918_v57 }
 0x661   :  { %1555 = vrcp.f32 %v910_v58 }
 0x66a   :  { %v1554_v59 = vpop.eup %1553 }
 0x66b   :  { %v920_v60 = vsub.f32 %v2006_v38, %v1554_v59  ;;  %v1556_v61 = vpop.eup %1555 }
 0x66d   :  { %v921_v62 = vmul.f32 %v1556_v61, %v920_v60 }
 0x66f   :  { %v2047_v63 = vadd.f32 %v1554_v59, %v921_v62  ;;  %v1151_v59 = vrot.slane %v1047_v41, 2 }
 0x671   :  { %v930_v23 = vpack.c.bf16 %v2047_v63, %v2047_v63  ;;  %v1153_v62 = vunpack.c.l.bf16 %v1151_v59 }
 0x673   :  { %964 = vmatmul.mubr.bf16.vlgmr.msra.gmra.mrb[24].mxu0 %v930_v23  ;;  %1432 = vmatmul.mubr.bf16.vlgmr.msra.gmra.mrb[24].mxu1 %v930_v23 }
 0x674   :  { %1050 = vmatpush1.bf16.msra.mxu0 %v1577_v25  ;;  %1436 = vmatpush3.bf16.msra.mxu1 %v1734_v9  ;;  %v1582_v9 = vld [vmem:[#allocation6 + $0x4c] ss:$12 sps:$4 sm:$0xff]  }
 0x675   :  { %1051 = vmatprep.subr.bf16.mxu0 %v1578_v28  ;;  %1437 = vmatprep.subr.bf16.mxu1 %v1662_v0 }
 0x676   :  { %1081 = vmatprep.mubr.bf16.mxu0 %v1663_v1  ;;  %1451 = vmatprep.mubr.msk.bf16.mxu1 %vm1664_vm0, %v1662_v0  ;;  %v1583_v1 = vld [vmem:[#allocation6 + $0x48] ss:$12 sps:$4 sm:$0xff]  }
 0x678   :  { %1052 = vmatpush1.bf16.msra.mxu0 %v1579_v29  ;;  %1438 = vmatpush3.bf16.msra.mxu1 %v1744_v12 }
 0x679   :  { %1053 = vmatprep.subr.bf16.mxu0 %v1580_v30  ;;  %1439 = vmatprep.subr.bf16.mxu1 %v1662_v0 }
 0x67c   :  { %1054 = vmatpush1.bf16.msra.mxu0 %v1581_v31  ;;  %1440 = vmatpush3.bf16.msra.mxu1 %v1750_v14 }
 0x67d   :  { %1055 = vmatprep.subr.bf16.mxu0 %v1582_v9  ;;  %1441 = vmatprep.subr.bf16.mxu1 %v1662_v0 }
 0x680   :  { %1056 = vmatpush1.bf16.msra.mxu0 %v1583_v1  ;;  %1442 = vmatpush3.bf16.msra.mxu1 %v1760_v17 }
 0x681   :  { %1057 = vmatprep.subr.bf16.mxu0 %v1741_v11  ;;  %1443 = vmatprep.subr.bf16.mxu1 %v1662_v0  ;;  %v929_v11 = vld [vmem:[#allocation3 + $0x12] sm:$0x7] }
 0x682   :  { %v1012_v12 = vunpack.c.l.bf16 %v929_v11  ;;  %v1021_v17 = vrot.slane %v929_v11, 1 }
 0x684   :  { %1058 = vmatpush1.bf16.msra.mxu0 %v1746_v13  ;;  %1444 = vmatpush3.bf16.msra.mxu1 %v1770_v20 }
 0x685   :  { %1059 = vmatprep.subr.bf16.mxu0 %v1753_v15  ;;  %1445 = vmatprep.subr.bf16.mxu1 %v1662_v0 }
 0x688   :  { %1060 = vmatpush1.bf16.msra.mxu0 %v1757_v16  ;;  %1446 = vmatpush3.bf16.msra.mxu1 %v1782_v24 }
 0x689   :  { %1061 = vmatprep.subr.bf16.mxu0 %v1763_v18  ;;  %1447 = vmatprep.subr.bf16.mxu1 %v1662_v0 }
 0x68c   :  { %1062 = vmatpush1.bf16.msra.mxu0 %v1767_v19  ;;  %1448 = vmatpush3.bf16.msra.mxu1 %v1790_v26 }
 0x68d   :  { %1063 = vmatprep.subr.bf16.mxu0 %v1773_v21  ;;  %1449 = vmatprep.subr.bf16.mxu1 %v1662_v0  ;;  %v1023_v21 = vunpack.c.l.bf16 %v1021_v17 }
 0x690   :  { %1064 = vmatpush1.bf16.msra.mxu0 %v1777_v22  ;;  %1450 = vmatpush3.bf16.msra.mxu1 %v1795_v27  ;;  %v1033_v27 = vrot.slane %v929_v11, 2 }
 0x692   :  { %v1035_v37 = vunpack.c.l.bf16 %v1033_v27 }
 0x746   :  { %v965_v13 = vpop.f32.mrb[24].mxu0  ;;  %v1006_v14 = vpop.f32.mrb[24].mxu1 }
 0x747   :  { %v1013_v15 = vadd.f32 %v1012_v12, %v965_v13  ;;  %v967_v16 = vpop.f32.mrb[25].mxu0  ;;  %v1433_v18 = vpop.f32.mrb[25].mxu1  ;;  %v1031_v36 = vadd.f32 %v1838_v46, %v1006_v14 }
 0x748   :  { %v969_v20 = vpop.f32.mrb[26].mxu0  ;;  %v1009_v19 = vpop.f32.mrb[26].mxu1  ;;  %v1024_v0 = vadd.f32 %v1023_v21, %v967_v16 }
 0x749   :  { %v1219_v24 = vmul.f32 -1.442695, %v1013_v15  ;;  %v970_v26 = vpop.f32.mrb[27].mxu0  ;;  %v1434_v32 = vpop.f32.mrb[27].mxu1 }
 0x74a   :  { %v1220_v33 = vmul.f32 -1.442695, %v1024_v0 }
 0x74b   :  { %1557 = vpow2.f32 %v1219_v24 }
 0x74c   :  { %1559 = vpow2.f32 %v1220_v33 }
 0x755   :  { %v1558_v22 = vpop.eup %1557 }
 0x756   :  { %v1017_v34 = vadd.f32 1.0, %v1558_v22  ;;  %v1560_v35 = vpop.eup %1559 }
 0x757   :  { %v1028_v4 = vadd.f32 1.0, %v1560_v35 }
 0x758   :  { %1561 = vrcp.f32 %v1017_v34 }
 0x762   :  { %v1562_v38 = vpop.eup %1561 }
 0x763   :  { %v1032_v39 = vmul.f32 %v1562_v38, %v1031_v36 }
 0x765   :  { %v1036_v3 = vadd.f32 %v1035_v37, %v1032_v39 }
 0x767   :  { %1563 = vtanh.f32 %v1036_v3 }
 0x768   :  { %1565 = vrcp.f32 %v1028_v4 }
 0x771   :  { %v1564_v5 = vpop.eup %1563 }
 0x772   :  { %v1038_v6 = vsub.f32 %v2047_v63, %v1564_v5  ;;  %v1566_v7 = vpop.eup %1565 }
 0x774   :  { %v1039_v8 = vmul.f32 %v1566_v7, %v1038_v6 }
 0x776   :  { %v1040_v10 = vadd.f32 %v1564_v5, %v1039_v8 }
 0x778   :  { %v1048_v40 = vpack.c.bf16 %v1040_v10, %v1040_v10 }
 0x77a   :  { %1082 = vmatmul.mubr.bf16.vlgmr.msra.gmra.mrb[28].mxu0 %v1048_v40  ;;  %1452 = vmatmul.mubr.bf16.vlgmr.msra.gmra.mrb[28].mxu1 %v1048_v40 }
 0x84d   :  { %v1083_v43 = vpop.f32.mrb[28].mxu0  ;;  %v1124_v44 = vpop.f32.mrb[28].mxu1 }
 0x84e   :  { %v1131_v45 = vadd.f32 %v1130_v42, %v1083_v43  ;;  %v1085_v47 = vpop.f32.mrb[29].mxu0  ;;  %v1453_v49 = vpop.f32.mrb[29].mxu1  ;;  %v1149_v61 = vadd.f32 %v1838_v46, %v1124_v44 }
 0x84f   :  { %v1087_v2 = vpop.f32.mrb[30].mxu0  ;;  %v1127_v50 = vpop.f32.mrb[30].mxu1  ;;  %v1142_v55 = vadd.f32 %v1141_v54, %v1085_v47 }
 0x850   :  { %v1221_v51 = vmul.f32 -1.442695, %v1131_v45  ;;  %v1088_v52 = vpop.f32.mrb[31].mxu0  ;;  %v1454_v53 = vpop.f32.mrb[31].mxu1 }
 0x851   :  { %v1222_v56 = vmul.f32 -1.442695, %v1142_v55 }
 0x852   :  { %1567 = vpow2.f32 %v1221_v51 }
 0x853   :  { %1569 = vpow2.f32 %v1222_v56 }
 0x85c   :  { %v1568_v57 = vpop.eup %1567 }
 0x85d   :  { %v1135_v58 = vadd.f32 1.0, %v1568_v57  ;;  %v1570_v60 = vpop.eup %1569 }
 0x85e   :  { %v1146_v28 = vadd.f32 1.0, %v1570_v60 }
 0x85f   :  { %1571 = vrcp.f32 %v1135_v58 }
 0x869   :  { %v1572_v63 = vpop.eup %1571 }
 0x86a   :  { %v1150_v23 = vmul.f32 %v1572_v63, %v1149_v61 }
 0x86c   :  { %v1154_v25 = vadd.f32 %v1153_v62, %v1150_v23 }
 0x86e   :  { %1573 = vtanh.f32 %v1154_v25 }
 0x86f   :  { %1575 = vrcp.f32 %v1146_v28 }
 0x878   :  { %v1574_v29 = vpop.eup %1573 }
 0x879   :  { %v1156_v30 = vsub.f32 %v1040_v10, %v1574_v29  ;;  %v1576_v31 = vpop.eup %1575 }
 0x87b   :  { %v1157_v9 = vmul.f32 %v1576_v31, %v1156_v30 }
 0x87d   :  { %v1158_v1 = vadd.f32 %v1574_v29, %v1157_v9 }
 0x87f   :  { %1164 = vst [vmem:[#allocation2] sm:$0x3] %v1158_v1  ;;  %1165 = vst [vmem:[#allocation8] sm:$0x3] %v1158_v1 }
 0x880   :  { %1639 = shalt.err (!%p1636_p6)
}
 0x881   :  { %s1640_s17 = scalar_lea.hbm %s2095_s3, 32 }
 0x882   :  { %p1641_p7 = scmp.ne.s32.totalorder %s2095_s3, %s1640_s17  ;;  %p1644_p8 = scmp.lt.u32.totalorder %s1640_s17, %s2095_s3 }
 0x884   :  { %p1646_p9 = pnand %p1644_p8, %p1641_p7 }
 0x886   :  { %1649 = shalt.err (!%p1646_p9)
}
 0x887   :  { %1175 = dma.vmem_to_hbm [thread:$0]  %s1173_s13, 32, %s2095_s3, [#allocation5]  }
 0x888   :  { %1654 = dma.done.wait [#allocation5], 32  }
 0x889   :  { %1655 = vsyncadd [#allocation5], 4294967264 }
 0x88a   :  { %1179 = vsyncpa [#allocation4], 1 }
 0x88b   :  { %1180 = vsyncpa [#allocation7], 1 }
 0x88c   :  { %1181 = vsyncpa [#allocation5], 1 }

</bundles_post_ra>
